<compile_context>
chip_gen: v5e
topology: v5e:2x2
jax: 0.10.0
libtpu: 0.0.40
codegen_flags: <defaults>
</compile_context>

<pallas_src>
import functools

import jax
import jax.numpy as jnp
import numpy as np
from jax import lax
from jax.experimental import pallas as pl
from jax.experimental.pallas import tpu as pltpu


def _round_up(x, m):
    return ((x + m - 1) // m) * m


def _textcnn_kernel(ids_ref, table_ref, wconv_ref, bconv_ref, wfc_ref, bfc_ref,
                    out_ref, *, vocab, l_out, compute_dtype):
    # ids_ref:   (TB, P, K)   int32  im2col'd token ids (pos-padded with 0)
    # table_ref: (KVp, KDp)   cdt    block-diag embedding table:
    #                                rows [k*V, k*V+V) x cols [k*D, k*D+D) = emb
    # wconv_ref: (KDp, F)     cdt    conv weight flattened over (tap, dim)
    # bconv_ref: (1, F)       f32    conv bias
    # wfc_ref:   (F, Cp)      f32    fc weight, lane-padded to Cp (mult of 128)
    # bfc_ref:   (1, Cp)      f32    fc bias (lane-padded)
    # out_ref:   (TB, Cp)     f32    lane-dense logits block
    TB, P, K = ids_ref.shape
    KVp = table_ref.shape[0]
    F = wconv_ref.shape[1]
    rows = TB * P

    ids = ids_ref[...]                                               # (TB, P, K)

    # Fused gather + im2col: one-hot over the stacked (tap, vocab) axis, matmul
    # against the block-diagonal table -> tap-concatenated activations on MXU.
    col = lax.broadcasted_iota(jnp.int32, (TB, P, KVp), 2)
    onehot = jnp.zeros((TB, P, KVp), compute_dtype)
    for k in range(K):                                               # K is tiny, static
        onehot = onehot + (col == (ids[:, :, k:k + 1] + k * vocab)).astype(compute_dtype)
    onehot = onehot.reshape(rows, KVp)                               # P % 16 == 0 -> layout-friendly

    x = jnp.dot(onehot, table_ref[...],
                preferred_element_type=jnp.float32).astype(compute_dtype)   # (rows, KDp)

    # Conv2d((K, D) kernel) as one 128-deep GEMM; bias + ReLU in f32.
    acc = jnp.dot(x, wconv_ref[...], preferred_element_type=jnp.float32)    # (rows, F)
    acc = jnp.maximum(acc + bconv_ref[...], 0.0)

    # Global max-pool over valid conv positions.  Padded positions (>= l_out)
    # are masked with 0, exact after ReLU (all outputs >= 0), so no
    # sublane-misaligned [:l_out] slice is needed.
    acc = acc.reshape(TB, P, F)
    pos = lax.broadcasted_iota(jnp.int32, (TB, P, F), 1)
    pooled = jnp.max(jnp.where(pos < l_out, acc, 0.0), axis=1)              # (TB, F)

    # TODO(synk): nn.Dropout is identity in eval mode; training-mode dropout not applied.

    out = jnp.dot(pooled, wfc_ref[...], preferred_element_type=jnp.float32)
    # TODO(synk): a bf16 (or width-C) logits block would halve/shrink the HBM
    # writeback, which now dominates traffic; kept f32 lane-dense for exactness.
    out_ref[...] = (out + bfc_ref[...]).astype(out_ref.dtype)


def textcnn_forward(token_ids, lengths, params, *, kernel_size=None,
                    batch_tile=128, use_bf16=True):
    """token_ids: (B, L) int32; lengths unused (matches the PyTorch forward)."""
    del lengths  # reference forward ignores lengths too (max-pool over full L)
    emb_table = params["embedding"]             # (V, D)
    wconv = params["conv_w"]                    # (K, D, F)
    bconv = params["conv_b"]                    # (1, F)
    wfc = params["fc_w"]                        # (F, C)
    bfc = params["fc_b"]                        # (1, C)

    B, L = token_ids.shape
    V, D = emb_table.shape
    K, _, F = wconv.shape
    if kernel_size is not None:
        assert kernel_size == K
    C = wfc.shape[1]
    assert L >= K

    cdt = jnp.bfloat16 if use_bf16 else jnp.float32

    l_out = L - K + 1                  # true conv output length
    P = _round_up(l_out, 16)           # sublane-tile aligned for bf16 and f32
    cp = _round_up(C, 128)             # lane-dense logits width
    kvp = _round_up(K * V, 128)        # one-hot / gather contraction depth
    kdp = _round_up(K * D, 128)        # im2col / conv contraction depth

    # Batch tiling: keep >= 2 grid steps so ("parallel",) shards across both
    # TensorCores on v7x; tb is a multiple of 8 for the (tb, cp) output block.
    tb = max(8, min(batch_tile, _round_up(max(B // 2, 1), 8)))
    b_pad = max(_round_up(B, tb), 2 * tb)

    # ---- glue: pure index plumbing + weight layout (no activation HBM traffic) ----
    # im2col of token ids: ids_g[b, p, k] = token_ids[b, p + k]
    pos = jnp.arange(l_out)[:, None] + jnp.arange(K)[None, :]               # (l_out, K)
    ids_g = jnp.take(token_ids.astype(jnp.int32), pos, axis=1)              # (B, l_out, K)
    ids_g = jnp.pad(ids_g, ((0, b_pad - B), (0, P - l_out), (0, 0)))        # (b_pad, P, K)

    # Block-diagonal bf16 embedding table (tap k block = emb_table).
    # TODO(synk): for realistic vocabularies keep the table in HBM (pl.ANY +
    # manual DMA) instead of a VMEM-resident (kvp, kdp) block.
    emb_c = emb_table.astype(cdt)
    table_bd = jnp.zeros((kvp, kdp), cdt)
    for k in range(K):
        table_bd = table_bd.at[k * V:(k + 1) * V, k * D:(k + 1) * D].set(emb_c)

    wconv_flat = jnp.zeros((kdp, F), cdt).at[:K * D, :].set(
        wconv.reshape(K * D, F).astype(cdt))
    bconv_f = bconv.astype(jnp.float32).reshape(1, F)
    wfc_p = jnp.zeros((F, cp), jnp.float32).at[:, :C].set(wfc.astype(jnp.float32))
    bfc_p = jnp.zeros((1, cp), jnp.float32).at[:, :C].set(bfc.astype(jnp.float32))

    kernel = functools.partial(_textcnn_kernel, vocab=V, l_out=l_out,
                               compute_dtype=cdt)
    grid_spec = pltpu.PrefetchScalarGridSpec(
        num_scalar_prefetch=0,
        grid=(b_pad // tb,),
        in_specs=[
            pl.BlockSpec((tb, P, K), lambda b: (b, 0, 0)),   # ids tile (tiny DMA)
            pl.BlockSpec((kvp, kdp), lambda b: (0, 0)),      # resident block-diag table
            pl.BlockSpec((kdp, F), lambda b: (0, 0)),        # resident conv weight
            pl.BlockSpec((1, F), lambda b: (0, 0)),          # conv bias
            pl.BlockSpec((F, cp), lambda b: (0, 0)),         # fc weight (lane-padded)
            pl.BlockSpec((1, cp), lambda b: (0, 0)),         # fc bias
        ],
        out_specs=pl.BlockSpec((tb, cp), lambda b: (b, 0)),
    )
    out = pl.pallas_call(
        kernel,
        out_shape=jax.ShapeDtypeStruct((b_pad, cp), jnp.float32),
        grid_spec=grid_spec,
        compiler_params=pltpu.CompilerParams(
            dimension_semantics=("parallel",),
            vmem_limit_bytes=48 * 1024 * 1024),
    )(ids_g, table_bd, wconv_flat, bconv_f, wfc_p, bfc_p)
    return out[:B, :C]


def init_params(key, *, vocab, vector_dim, kernel_size, filter_num, class_num):
    k0, k1, k2, k3, k4 = jax.random.split(key, 5)
    emb = jax.random.normal(k0, (vocab, vector_dim), jnp.float32) * 0.1
    # PyTorch conv weight shape: (F, 1, K, D) -> stored as (K, D, F)
    conv_w = jax.random.normal(k1, (kernel_size, vector_dim, filter_num),
                               jnp.float32) * 0.1
    conv_b = jax.random.normal(k2, (1, filter_num), jnp.float32) * 0.1
    # PyTorch fc weight shape: (C, F) -> stored transposed as (F, C)
    fc_w = jax.random.normal(k3, (filter_num, class_num), jnp.float32) * 0.1
    fc_b = jax.random.normal(k4, (1, class_num), jnp.float32) * 0.1
    return {"embedding": emb, "conv_w": conv_w, "conv_b": conv_b,
            "fc_w": fc_w, "fc_b": fc_b}


def reference_forward(token_ids, params, *, use_bf16=True):
    # Pure-JAX reference mirroring the PyTorch forward (eval mode), using the same
    # bf16-rounded embeddings / conv weights as the kernel.
    compute_dtype = jnp.bfloat16 if use_bf16 else jnp.float32
    emb = jnp.take(params["embedding"], token_ids, axis=0)
    emb = emb.astype(compute_dtype).astype(jnp.float32)           # (B, L, D)
    wconv = params["conv_w"].astype(compute_dtype).astype(jnp.float32)
    K, D, F = params["conv_w"].shape
    L = emb.shape[1]
    L_out = L - K + 1
    conv = jnp.zeros((emb.shape[0], L_out, F), jnp.float32)
    for k in range(K):
        conv = conv + jnp.einsum("bld,df->blf", emb[:, k:k + L_out, :], wconv[k])
    conv = conv + params["conv_b"].astype(jnp.float32)[None, :, :]
    conv = jnp.maximum(conv, 0.0)
    pooled = jnp.max(conv, axis=1)                                 # (B, F)
    return (pooled @ params["fc_w"].astype(jnp.float32)
            + params["fc_b"].astype(jnp.float32))                  # (B, C)


if __name__ == "__main__":
    # config: vocabulary_size=50, vector_dim=32, kernel_size=3,
    #         filter_num=16, class_num=4
    VOCAB, D, K, F, C = 50, 32, 3, 16, 4
    B, L = 2, 16

    key = jax.random.PRNGKey(0)
    kp, kx = jax.random.split(key, 2)
    params = init_params(kp, vocab=VOCAB, vector_dim=D, kernel_size=K,
                         filter_num=F, class_num=C)
    token_ids = jax.random.randint(kx, (B, L), 0, VOCAB, dtype=jnp.int32)
    lengths = jnp.full((B,), L, dtype=jnp.int32)   # unused, kept for API parity

    out = textcnn_forward(token_ids, lengths, params, kernel_size=K)
    out = jax.block_until_ready(out)

    ref = reference_forward(token_ids, params)
    assert out.shape == (B, C)
    np.testing.assert_allclose(np.asarray(out), np.asarray(ref),
                               rtol=1e-2, atol=1e-2)
    print("KERNEL_OK")
</pallas_src>

<mosaic_0001>
module attributes {stable_mosaic.version = 11 : i64} {
  func.func @_textcnn_kernel(%arg0: i32, %arg1: memref<8x16x3xi32, #tpu.memory_space<vmem>>, %arg2: memref<256x128xbf16, #tpu.memory_space<vmem>>, %arg3: memref<128x16xbf16, #tpu.memory_space<vmem>>, %arg4: memref<1x16xf32, #tpu.memory_space<vmem>>, %arg5: memref<16x128xf32, #tpu.memory_space<vmem>>, %arg6: memref<1x128xf32, #tpu.memory_space<vmem>>, %arg7: memref<8x128xf32, #tpu.memory_space<vmem>>) attributes {dimension_semantics = [#tpu.dimension_semantics<parallel>], iteration_bounds = array<i64: 2>, scalar_prefetch = 0 : i64, scratch_operands = 0 : i64, tpu.core_type = #tpu.core_type<tc>, window_params = [{transform_indices = @transform_0, window_bounds = array<i64: 8, 16, 3>}, {pipeline_mode = #tpu.pipeline_mode<synchronous>, transform_indices = @transform_1, window_bounds = array<i64: 256, 128>}, {pipeline_mode = #tpu.pipeline_mode<synchronous>, transform_indices = @transform_2, window_bounds = array<i64: 128, 16>}, {pipeline_mode = #tpu.pipeline_mode<synchronous>, transform_indices = @transform_3, window_bounds = array<i64: 1, 16>}, {pipeline_mode = #tpu.pipeline_mode<synchronous>, transform_indices = @transform_4, window_bounds = array<i64: 16, 128>}, {pipeline_mode = #tpu.pipeline_mode<synchronous>, transform_indices = @transform_5, window_bounds = array<i64: 1, 128>}, {transform_indices = @transform_6, window_bounds = array<i64: 8, 128>}]} {
    %c0 = arith.constant 0 : index
    %c0_0 = arith.constant 0 : index
    %c0_1 = arith.constant 0 : index
    %0 = vector.load %arg1[%c0, %c0_0, %c0_1] : memref<8x16x3xi32, #tpu.memory_space<vmem>>, vector<8x16x3xi32>
    %1 = tpu.iota {dimensions = array<i32: 2>} : vector<8x16x256xi32>
    %cst = arith.constant 0.000000e+00 : bf16
    %2 = vector.broadcast %cst : bf16 to vector<8x16x256xbf16>
    %3 = vector.extract_strided_slice %0 {offsets = [0, 0, 0], sizes = [8, 16, 1], strides = [1, 1, 1]} : vector<8x16x3xi32> to vector<8x16x1xi32>
    %c0_i32 = arith.constant 0 : i32
    %4 = vector.broadcast %c0_i32 : i32 to vector<8x16x1xi32>
    %5 = arith.addi %3, %4 : vector<8x16x1xi32>
    %6 = vector.broadcast %5 : vector<8x16x1xi32> to vector<8x16x256xi32>
    %7 = arith.cmpi eq, %1, %6 : vector<8x16x256xi32>
    %8 = arith.extui %7 : vector<8x16x256xi1> to vector<8x16x256xi32>
    %9 = arith.sitofp %8 : vector<8x16x256xi32> to vector<8x16x256xf32>
    %10 = arith.truncf %9 : vector<8x16x256xf32> to vector<8x16x256xbf16>
    %11 = arith.addf %2, %10 : vector<8x16x256xbf16>
    %12 = vector.extract_strided_slice %0 {offsets = [0, 0, 1], sizes = [8, 16, 1], strides = [1, 1, 1]} : vector<8x16x3xi32> to vector<8x16x1xi32>
    %c50_i32 = arith.constant 50 : i32
    %13 = vector.broadcast %c50_i32 : i32 to vector<8x16x1xi32>
    %14 = arith.addi %12, %13 : vector<8x16x1xi32>
    %15 = vector.broadcast %14 : vector<8x16x1xi32> to vector<8x16x256xi32>
    %16 = arith.cmpi eq, %1, %15 : vector<8x16x256xi32>
    %17 = arith.extui %16 : vector<8x16x256xi1> to vector<8x16x256xi32>
    %18 = arith.sitofp %17 : vector<8x16x256xi32> to vector<8x16x256xf32>
    %19 = arith.truncf %18 : vector<8x16x256xf32> to vector<8x16x256xbf16>
    %20 = arith.addf %11, %19 : vector<8x16x256xbf16>
    %21 = vector.extract_strided_slice %0 {offsets = [0, 0, 2], sizes = [8, 16, 1], strides = [1, 1, 1]} : vector<8x16x3xi32> to vector<8x16x1xi32>
    %c100_i32 = arith.constant 100 : i32
    %22 = vector.broadcast %c100_i32 : i32 to vector<8x16x1xi32>
    %23 = arith.addi %21, %22 : vector<8x16x1xi32>
    %24 = vector.broadcast %23 : vector<8x16x1xi32> to vector<8x16x256xi32>
    %25 = arith.cmpi eq, %1, %24 : vector<8x16x256xi32>
    %26 = arith.extui %25 : vector<8x16x256xi1> to vector<8x16x256xi32>
    %27 = arith.sitofp %26 : vector<8x16x256xi32> to vector<8x16x256xf32>
    %28 = arith.truncf %27 : vector<8x16x256xf32> to vector<8x16x256xbf16>
    %29 = arith.addf %20, %28 : vector<8x16x256xbf16>
    %30 = vector.shape_cast %29 : vector<8x16x256xbf16> to vector<128x256xbf16>
    %c0_2 = arith.constant 0 : index
    %c0_3 = arith.constant 0 : index
    %31 = vector.load %arg2[%c0_2, %c0_3] : memref<256x128xbf16, #tpu.memory_space<vmem>>, vector<256x128xbf16>
    %cst_4 = arith.constant dense<0.000000e+00> : vector<128x128xf32>
    %32 = tpu.matmul %30, %31, %cst_4 {dimension_numbers = #tpu.dot_dimension_numbers<[1], [0], [0], [1], [0, 0, 1, 1], [], []>} : vector<128x256xbf16>, vector<256x128xbf16>, vector<128x128xf32> -> vector<128x128xf32>
    %33 = arith.truncf %32 : vector<128x128xf32> to vector<128x128xbf16>
    %c0_5 = arith.constant 0 : index
    %c0_6 = arith.constant 0 : index
    %34 = vector.load %arg3[%c0_5, %c0_6] : memref<128x16xbf16, #tpu.memory_space<vmem>>, vector<128x16xbf16>
    %cst_7 = arith.constant dense<0.000000e+00> : vector<128x16xf32>
    %35 = tpu.matmul %33, %34, %cst_7 {dimension_numbers = #tpu.dot_dimension_numbers<[1], [0], [0], [1], [0, 0, 1, 1], [], []>} : vector<128x128xbf16>, vector<128x16xbf16>, vector<128x16xf32> -> vector<128x16xf32>
    %c0_8 = arith.constant 0 : index
    %c0_9 = arith.constant 0 : index
    %36 = vector.load %arg4[%c0_8, %c0_9] : memref<1x16xf32, #tpu.memory_space<vmem>>, vector<1x16xf32>
    %37 = vector.broadcast %36 : vector<1x16xf32> to vector<128x16xf32>
    %38 = arith.addf %35, %37 : vector<128x16xf32>
    %cst_10 = arith.constant 0.000000e+00 : f32
    %39 = vector.broadcast %cst_10 : f32 to vector<128x16xf32>
    %40 = arith.maximumf %38, %39 : vector<128x16xf32>
    %41 = vector.shape_cast %40 : vector<128x16xf32> to vector<8x16x16xf32>
    %42 = tpu.iota {dimensions = array<i32: 1>} : vector<8x16x16xi32>
    %c14_i32 = arith.constant 14 : i32
    %43 = vector.broadcast %c14_i32 : i32 to vector<8x16x16xi32>
    %44 = arith.cmpi slt, %42, %43 : vector<8x16x16xi32>
    %cst_11 = arith.constant 0.000000e+00 : f32
    %45 = vector.broadcast %cst_11 : f32 to vector<8x16x16xf32>
    %46 = arith.select %44, %41, %45 : vector<8x16x16xi1>, vector<8x16x16xf32>
    %cst_12 = arith.constant dense<0xFF800000> : vector<8x16xf32>
    %47 = vector.multi_reduction <maximumf>, %46, %cst_12 [1] : vector<8x16x16xf32> to vector<8x16xf32>
    %c0_13 = arith.constant 0 : index
    %c0_14 = arith.constant 0 : index
    %48 = vector.load %arg5[%c0_13, %c0_14] : memref<16x128xf32, #tpu.memory_space<vmem>>, vector<16x128xf32>
    %cst_15 = arith.constant dense<0.000000e+00> : vector<8x128xf32>
    %49 = tpu.matmul %47, %48, %cst_15 {dimension_numbers = #tpu.dot_dimension_numbers<[1], [0], [0], [1], [0, 0, 1, 1], [], []>} : vector<8x16xf32>, vector<16x128xf32>, vector<8x128xf32> -> vector<8x128xf32>
    %c0_16 = arith.constant 0 : index
    %c0_17 = arith.constant 0 : index
    %50 = vector.load %arg6[%c0_16, %c0_17] : memref<1x128xf32, #tpu.memory_space<vmem>>, vector<1x128xf32>
    %51 = vector.broadcast %50 : vector<1x128xf32> to vector<8x128xf32>
    %52 = arith.addf %49, %51 : vector<8x128xf32>
    %c0_18 = arith.constant 0 : index
    %c0_19 = arith.constant 0 : index
    %53 = vector.load %arg7[%c0_18, %c0_19] : memref<8x128xf32, #tpu.memory_space<vmem>>, vector<8x128xf32>
    tpu.vector_store %arg7[%c0_18, %c0_19], %52 {strides = array<i32>} : memref<8x128xf32, #tpu.memory_space<vmem>>, vector<8x128xf32>,
    return
  }
  func.func @transform_0(%arg0: i32) -> (i32, i32, i32) {
    %c0_i32 = arith.constant 0 : i32
    %c0_i32_0 = arith.constant 0 : i32
    %c0_i32_1 = arith.constant 0 : i32
    return %arg0, %c0_i32, %c0_i32_0 : i32, i32, i32
  }
  func.func @transform_1(%arg0: i32) -> (i32, i32) {
    %c0_i32 = arith.constant 0 : i32
    %c0_i32_0 = arith.constant 0 : i32
    %c0_i32_1 = arith.constant 0 : i32
    return %c0_i32, %c0_i32_0 : i32, i32
  }
  func.func @transform_2(%arg0: i32) -> (i32, i32) {
    %c0_i32 = arith.constant 0 : i32
    %c0_i32_0 = arith.constant 0 : i32
    %c0_i32_1 = arith.constant 0 : i32
    return %c0_i32, %c0_i32_0 : i32, i32
  }
  func.func @transform_3(%arg0: i32) -> (i32, i32) {
    %c0_i32 = arith.constant 0 : i32
    %c0_i32_0 = arith.constant 0 : i32
    %c0_i32_1 = arith.constant 0 : i32
    return %c0_i32, %c0_i32_0 : i32, i32
  }
  func.func @transform_4(%arg0: i32) -> (i32, i32) {
    %c0_i32 = arith.constant 0 : i32
    %c0_i32_0 = arith.constant 0 : i32
    %c0_i32_1 = arith.constant 0 : i32
    return %c0_i32, %c0_i32_0 : i32, i32
  }
  func.func @transform_5(%arg0: i32) -> (i32, i32) {
    %c0_i32 = arith.constant 0 : i32
    %c0_i32_0 = arith.constant 0 : i32
    %c0_i32_1 = arith.constant 0 : i32
    return %c0_i32, %c0_i32_0 : i32, i32
  }
  func.func @transform_6(%arg0: i32) -> (i32, i32) {
    %c0_i32 = arith.constant 0 : i32
    %c0_i32_0 = arith.constant 0 : i32
    return %arg0, %c0_i32 : i32, i32
  }
}

</mosaic_0001>

<bundles_post_ra>
// kernel: tpu_custom_call.1
= control target key start
LH: loop header
LB: loop body
LE: loop exit
PB: predicated region body
PF: predicated region fallthrough
CT: control target
= control target key end

     0   :  { %11 = vsyncpa [#allocation3], 0  ;;  %s2834_s0 = inlined_call_operand.vmem [shape: s32[16,16,3], index: 0, kind: input, shape index: {}]   ;;  %s2835_s1 = inlined_call_operand.vmem [shape: bf16[256,128], index: 1, kind: input, shape index: {}]   ;;  %s2836_s2 = inlined_call_operand.vmem [shape: bf16[128,16], index: 2, kind: input, shape index: {}]   ;;  %s2837_s3 = inlined_call_operand.vmem [shape: f32[1,16], index: 3, kind: input, shape index: {}]   ;;  %s2838_s4 = inlined_call_operand.vmem [shape: f32[16,128], index: 4, kind: input, shape index: {}]   ;;  %s2839_s5 = inlined_call_operand.vmem [shape: f32[1,128], index: 5, kind: input, shape index: {}]   ;;  %s2840_s6 = inlined_call_operand.hbm [shape: f32[16,128], index: 6, kind: output, shape index: {}]  }
   0x1   :  { %13 = vsyncpa [#allocation3 + $0x1], 0  ;;  %s2199_s21 = smov 0   ;;  %s2201_s22 = smov 0  }
   0x2   :  { %s2203_s23 = smov 0   ;;  %s2205_s24 = smov 0  }
   0x3 LB: > { %s1756_s25 = sadd.s32 4294967295, %s2158_s24   ;;  %s1757_s26 = sadd.s32 4294967294, %s2158_s24   ;;  %s2158_s24 = sphi %s2205_s24, %s2846_s24   ;;  %s2154_s23 = sphi %s2203_s23, %s2845_s23   ;;  %s2150_s22 = sphi %s2201_s22, %s2844_s22   ;;  %s2146_s21 = sphi %s2199_s21, %s2843_s21  }
   0x4   : > { %s2222_s27 = sadd.s32 1, %s2158_s24   ;;  %s157_s28 = sadd.s32 1, %s2154_s23 }
   0x5   : > { %s154_s29 = ssub.s32 %s2158_s24, %s2222_s27  ;;  %p167_p0 = scmp.ne.s32.totalorder %s2154_s23, %s2150_s22 }
   0x6   : > { %p155_p1 = scmp.eq.s32.totalorder %s154_s29, 0  ;;  %p168_p2 = scmp.eq.s32.totalorder %s1756_s25, 1 }
   0x7   : > { %p173_p3 = scmp.ne.s32.totalorder %s2150_s22, %s2146_s21  ;;  %p174_p4 = scmp.eq.s32.totalorder %s1757_s26, 1 }
   0x8   : > { %s2232_s30 = scalar_select %p155_p1, %s2154_s23, %s157_s28  }
   0x9   : > { %p2234_p5 = por %p168_p2, %p167_p0  ;;  %p2238_p6 = por %p174_p4, %p173_p3 }
   0xa   : > { %p1760_p7 = scmp.ge.s32.totalorder %s2158_s24, 1  ;;  %p217_p8 = scmp.lt.s32.totalorder %s2158_s24, 3 }
   0xc   : > { %p218_p9 = pnand %p1760_p7, %p217_p8 }
   0xd   : > { %s2244_s9 = sshll.u32 (!%p218_p9), %s1756_s25, 3  ;;  %s2116_s29 = scalar_lea.hbm (!%p218_p9), %s2840_s6, 16 }
   0xe   : > { %221 = sbr.rel (%p218_p9) target bundleno = 739 (0x2e3), region = 44  ;;  %p249_p10 = scmp.lt.s32.totalorder (!%p218_p9), %s2244_s9, 15 }
   0xf   : > { %s1693_s15 = scalar_lea.hbm (!%p218_p9), %s2840_s6, %s2244_s9 }
  0x10   : > { %s1697_s19 = sshll.u32 (!%p218_p9), %s1693_s15, 4  ;;  %s1698_s19 = int_to_ptr.hbm [resolvable:$true] %s1697_s19 }
  0x11   : > { %s2110_s25 = sshra.s32 (!%p218_p9), %s1698_s19, 4  ;;  %s2111_s25 = int_to_ptr.hbm [resolvable:$true] %s2110_s25 }
  0x12   : > { %s2112_s26 = scalar_lea.hbm (!%p218_p9), %s2111_s25, 8  ;;  %p2117_p0 = scmp.lt.s32.totalorder (!%p218_p9), %s2111_s25, %s2840_s6 }
  0x13   : > { %v2160_v0 = vmov 0   ;;  %v2161_v1 = vmov 1   ;;  %v2162_v2 = vmov 2   ;;  %s250_s10 = scalar_select %p249_p10, %s2244_s9, 15  ;;  %v1970_v32 = vld [vmem:[%s2835_s1 + $0x38] sm:$0xff]  ;;  %v1969_v36 = vld [vmem:[%s2835_s1 + $0x30] sm:$0xff]  ;;  %v271_v54 = vlaneseq }
  0x14   : > { %2054 = vset.pattern.permute.xlu0 %v2160_v0  ;;  %2055 = vset.pattern.permute.xlu1 %v2161_v1  ;;  %v2295_v33 = vld [vmem:[%s2835_s1 + $0x78] sm:$0xff]  ;;  %v2304_v37 = vld [vmem:[%s2835_s1 + $0x70] sm:$0xff]  ;;  %v1968_v39 = vld [vmem:[%s2835_s1 + $0x28] sm:$0xff]  ;;  %p2113_p11 = scmp.ne.s32.totalorder %s2111_s25, %s2112_s26  ;;  %p2118_p1 = scmp.lt.s32.totalorder %s2116_s29, %s2112_s26 }
  0x15   : > { %2057 = vset.pattern.permute.xlu2 %v2162_v2  ;;  %s1962_s11 = sshll.u32 %s250_s10, 4  ;;  %1298 = vmatpush.bf16.msra.mxu0 %v1970_v32  ;;  %v2316_v40 = vld [vmem:[%s2835_s1 + $0x68] sm:$0xff]  ;;  %v1967_v43 = vld [vmem:[%s2835_s1 + $0x20] sm:$0xff]  ;;  %v1966_v45 = vld [vmem:[%s2835_s1 + $0x18] sm:$0xff]  ;;  %v2379_v59 = vand.u32 127, %v271_v54  ;;  %s245_s10 = sand.u32 1, %s2150_s22  }
  0x16   : > { %s2254_s14 = scalar_lea.vmem %s2834_s0, %s1962_s11  ;;  %1347 = vmatpush.bf16.msra.mxu1 %v2295_v33  ;;  %1987 = vmatpush.bf16.msra.mxu3 %v1970_v32  ;;  %v2325_v44 = vld [vmem:[%s2835_s1 + $0x60] sm:$0xff]  ;;  %v2336_v46 = vld [vmem:[%s2835_s1 + $0x58] sm:$0xff]  ;;  %v1965_v49 = vld [vmem:[%s2835_s1 + $0x10] sm:$0xff]  ;;  %s1761_s11 = sshll.u32 %s245_s10, 3 }
  0x17   : > { %v255_v3 = vld [vmem:[%s2254_s14] sm:$0xff]  ;;  %v256_v6 = vld [vmem:[%s2254_s14 + $0x8] sm:$0xff]  ;;  %v257_v9 = vld [vmem:[%s2254_s14 + $0x10] sm:$0xff]  ;;  %v2391_v62 = vadd.s32 128, %v2379_v59  ;;  %s247_s18 = scalar_lea.vmem [#allocation2], %s1761_s11  ;;  %s1683_s20 = scalar_lea.sflag [#allocation3], %s245_s10 }
  0x18   : > { %275 = vperm.xlu0 %2054, %v255_v3   ;;  %v514_v4 = vadd.s32 50, %v255_v3  ;;  %v802_v5 = vadd.s32 100, %v255_v3  ;;  %v515_v7 = vadd.s32 50, %v256_v6  ;;  %v803_v8 = vadd.s32 100, %v256_v6  ;;  %v258_v11 = vld [vmem:[%s2254_s14 + $0x18] sm:$0xff]  ;;  %v259_v15 = vld [vmem:[%s2254_s14 + $0x20] sm:$0xff]  ;;  %p2114_p12 = pnand %p2113_p11, %p2234_p5  ;;  %p2119_p2 = por %p2118_p1, %p2117_p0 }
  0x19   : > { %v516_v10 = vadd.s32 50, %v257_v9  ;;  %v517_v12 = vadd.s32 50, %v258_v11  ;;  %v804_v13 = vadd.s32 100, %v257_v9  ;;  %v805_v14 = vadd.s32 100, %v258_v11  ;;  %v260_v17 = vld [vmem:[%s2254_s14 + $0x28] sm:$0xff]  ;;  %v261_v21 = vld [vmem:[%s2254_s14 + $0x30] sm:$0xff]  ;;  %1299 = vmatpush.bf16.msra.mxu0 %v1969_v36 }
  0x1a   : > { %531 = vperm.xlu1 %2055, %v514_v4   ;;  %819 = vperm.xlu2 %2057, %v802_v5   ;;  %v518_v16 = vadd.s32 50, %v259_v15  ;;  %v807_v18 = vadd.s32 100, %v260_v17  ;;  %v519_v19 = vadd.s32 50, %v260_v17  ;;  %v806_v20 = vadd.s32 100, %v259_v15  ;;  %v262_v23 = vld [vmem:[%s2254_s14 + $0x38] sm:$0xff]  ;;  %v264_v24 = vld [vmem:[%s2254_s14 + $0x48] sm:$0xff]  ;;  %p2115_p13 = pneg %p2114_p12 }
  0x1b   : > { %v808_v22 = vadd.s32 100, %v261_v21  ;;  %v520_v25 = vadd.s32 50, %v261_v21  ;;  %v521_v26 = vadd.s32 50, %v262_v23  ;;  %v269_v27 = vld [vmem:[%s2254_s14 + $0x70] sm:$0xff]  ;;  %v809_v28 = vadd.s32 100, %v262_v23  ;;  %v2282_v29 = vld [vmem:[%s2254_s14 + $0x78] sm:$0xff]  ;;  %1348 = vmatpush.bf16.msra.mxu1 %v2304_v37  ;;  %1988 = vmatpush.bf16.msra.mxu3 %v1969_v36 }
  0x1c   : > { %v263_v30 = vld [vmem:[%s2254_s14 + $0x40] sm:$0xff]  ;;  %v529_v31 = vadd.s32 50, %v2282_v29  ;;  %v523_v35 = vadd.s32 50, %v264_v24  ;;  %v816_v38 = vadd.s32 100, %v269_v27  ;;  %v811_v42 = vadd.s32 100, %v264_v24  ;;  %v2348_v50 = vld [vmem:[%s2835_s1 + $0x50] sm:$0xff]  ;;  %p2120_p3 = pnand %p2119_p2, %p2115_p13 }
  0x1d   : > { %v522_v34 = vadd.s32 50, %v263_v30  ;;  %v810_v41 = vadd.s32 100, %v263_v30  ;;  %1300 = vmatpush.bf16.msra.mxu0 %v1968_v39  ;;  %v528_v48 = vadd.s32 50, %v269_v27  ;;  %v1964_v51 = vld [vmem:[%s2835_s1 + $0x8] sm:$0xff]  ;;  %v265_v55 = vld [vmem:[%s2254_s14 + $0x50] sm:$0xff]  ;;  %v1963_v56 = vld [vmem:[%s2835_s1] sm:$0xff] }
  0x1e   : > { %v2360_v52 = vld [vmem:[%s2835_s1 + $0x48] sm:$0xff]  ;;  %v2370_v57 = vld [vmem:[%s2254_s14 + $0x58] sm:$0xff]  ;;  %v2375_v58 = vld [vmem:[%s2835_s1 + $0x40] sm:$0xff]  ;;  %v524_v63 = vadd.s32 50, %v265_v55  ;;  %v2163_v5 = vmov 0.0  }
  0x1f   : > { %1349 = vmatpush.bf16.msra.mxu1 %v2316_v40  ;;  %1989 = vmatpush.bf16.msra.mxu3 %v1968_v39  ;;  %v2384_v60 = vld [vmem:[%s2254_s14 + $0x68] sm:$0xff]  ;;  %v525_v4 = vadd.s32 50, %v2370_v57 }
  0x20   : > { %278 = vperm.xlu0 %2054, %v256_v6  }
  0x21   : > { %1301 = vmatpush.bf16.msra.mxu0 %v1967_v43 }
  0x22   : > { %534 = vperm.xlu1 %2055, %v515_v7   ;;  %822 = vperm.xlu2 %2057, %v803_v8  }
  0x23   : > { %1350 = vmatpush.bf16.msra.mxu1 %v2325_v44  ;;  %1990 = vmatpush.bf16.msra.mxu3 %v1967_v43 }
  0x25   : > { %1302 = vmatpush.bf16.msra.mxu0 %v1966_v45 }
  0x27   : > { %1351 = vmatpush.bf16.msra.mxu1 %v2336_v46  ;;  %1991 = vmatpush.bf16.msra.mxu3 %v1966_v45 }
  0x28   : > { %281 = vperm.xlu0 %2054, %v257_v9  }
  0x29   : > { %1303 = vmatpush.bf16.msra.mxu0 %v1965_v49 }
  0x2a   : > { %2056 = vset.pattern.permute.xlu1 %v2160_v0  ;;  %2058 = vset.pattern.permute.xlu2 %v2161_v1 }
  0x2b   : > { %284 = vperm.xlu1 %2056, %v258_v11   ;;  %537 = vperm.xlu2 %2058, %v516_v10  }
  0x2c   : > { %1352 = vmatpush.bf16.msra.mxu1 %v2348_v50  ;;  %1992 = vmatpush.bf16.msra.mxu3 %v1965_v49 }
  0x2d   : > { %1304 = vmatpush.bf16.msra.mxu0 %v1964_v51 }
  0x30   : > { %2059 = vset.pattern.permute.xlu0 %v2161_v1  ;;  %1353 = vmatpush.bf16.msra.mxu1 %v2360_v52 }
  0x31   : > { %540 = vperm.xlu0 %2059, %v517_v12   ;;  %1993 = vmatpush.bf16.msra.mxu3 %v1964_v51  ;;  %v267_v51 = vld [vmem:[%s2254_s14 + $0x60] sm:$0xff]  ;;  %s1695_s14 = sshll.u32 %s247_s18, 4  ;;  %s1696_s14 = int_to_ptr.vmem [resolvable:$true] %s1695_s14 }
  0x32   : > { %1305 = vmatpush.bf16.msra.mxu0 %v1963_v56 }
  0x33   : > { %2060 = vset.pattern.permute.xlu1 %v2162_v2  ;;  %2061 = vset.pattern.permute.xlu2 %v2162_v2 }
  0x34   : > { %825 = vperm.xlu1 %2060, %v804_v13   ;;  %828 = vperm.xlu2 %2061, %v805_v14  }
  0x35   : > { %1354 = vmatpush.bf16.msra.mxu1 %v2375_v58  ;;  %1994 = vmatpush.bf16.msra.mxu3 %v1963_v56 }
  0x39   : > { %543 = vperm.xlu0 %2059, %v518_v16   ;;  %1995 = vmatpush.bf16.msrb.mxu3 %v2295_v33 }
  0x3c   : > { %2062 = vset.pattern.permute.xlu1 %v2160_v0  ;;  %2063 = vset.pattern.permute.xlu2 %v2160_v0 }
  0x3d   : > { %287 = vperm.xlu1 %2062, %v259_v15   ;;  %290 = vperm.xlu2 %2063, %v260_v17   ;;  %v817_v15 = vadd.s32 100, %v2282_v29  ;;  %v812_v17 = vadd.s32 100, %v265_v55 }
  0x3e   : > { %1996 = vmatpush.bf16.msrb.mxu3 %v2304_v37 }
  0x41   : > { %2066 = vset.pattern.permute.xlu0 %v2162_v2 }
  0x42   : > { %834 = vperm.xlu0 %2066, %v807_v18   ;;  %1997 = vmatpush.bf16.msrb.mxu3 %v2316_v40 }
  0x45   : > { %2064 = vset.pattern.permute.xlu1 %v2161_v1  ;;  %2065 = vset.pattern.permute.xlu2 %v2162_v2 }
  0x46   : > { %546 = vperm.xlu1 %2064, %v519_v19   ;;  %831 = vperm.xlu2 %2065, %v806_v20  }
  0x47   : > { %1998 = vmatpush.bf16.msrb.mxu3 %v2325_v44 }
  0x4a   : > { %837 = vperm.xlu0 %2066, %v808_v22  }
  0x4b   : > { %1999 = vmatpush.bf16.msrb.mxu3 %v2336_v46 }
  0x4e   : > { %2067 = vset.pattern.permute.xlu1 %v2160_v0  ;;  %2068 = vset.pattern.permute.xlu2 %v2160_v0 }
  0x4f   : > { %293 = vperm.xlu1 %2067, %v261_v21   ;;  %296 = vperm.xlu2 %2068, %v262_v23  }
  0x50   : > { %2000 = vmatpush.bf16.msrb.mxu3 %v2348_v50 }
  0x52   : > { %2073 = vset.pattern.permute.xlu0 %v2160_v0 }
  0x53   : > { %302 = vperm.xlu0 %2073, %v264_v24  }
  0x54   : > { %2001 = vmatpush.bf16.msrb.mxu3 %v2360_v52 }
  0x57   : > { %2069 = vset.pattern.permute.xlu1 %v2161_v1  ;;  %2070 = vset.pattern.permute.xlu2 %v2161_v1 }
  0x58   : > { %549 = vperm.xlu1 %2069, %v520_v25   ;;  %552 = vperm.xlu2 %2070, %v521_v26  }
  0x59   : > { %2002 = vmatpush.bf16.msrb.mxu3 %v2375_v58 }
  0x5b   : > { %317 = vperm.xlu0 %2073, %v269_v27  }
  0x60   : > { %2071 = vset.pattern.permute.xlu1 %v2162_v2  ;;  %2072 = vset.pattern.permute.xlu2 %v2160_v0 }
  0x61   : > { %840 = vperm.xlu1 %2071, %v809_v28   ;;  %299 = vperm.xlu2 %2072, %v263_v30  }
  0x63   : > { %2080 = vset.pattern.permute.xlu0 %v2161_v1 }
  0x64   : > { %576 = vperm.xlu0 %2080, %v529_v31  }
  0x69   : > { %2074 = vset.pattern.permute.xlu1 %v2161_v1  ;;  %2075 = vset.pattern.permute.xlu2 %v2161_v1 }
  0x6a   : > { %555 = vperm.xlu1 %2074, %v522_v34   ;;  %558 = vperm.xlu2 %2075, %v523_v35   ;;  %v813_v35 = vadd.s32 100, %v2370_v57 }
  0x6c   : > { %2084 = vset.pattern.permute.xlu0 %v2162_v2 }
  0x6d   : > { %861 = vperm.xlu0 %2084, %v816_v38  }
  0x72   : > { %2076 = vset.pattern.permute.xlu1 %v2162_v2  ;;  %2077 = vset.pattern.permute.xlu2 %v2162_v2 }
  0x73   : > { %843 = vperm.xlu1 %2076, %v810_v41   ;;  %846 = vperm.xlu2 %2077, %v811_v42  }
  0x74   : > { %v2339_v47 = vpop.permute.xlu2 %819 }
  0x75   : > { %2088 = vset.pattern.permute.xlu0 %v2160_v0  ;;  %vm866_vm6 = vcmp.eq.s32.totalorder %v2379_v59, %v2339_v47  ;;  %vm867_vm7 = vcmp.eq.s32.totalorder %v2391_v62, %v2339_v47 }
  0x76   : > { %314 = vperm.xlu0 %2088, %v2384_v60   ;;  %v1829_v27 = vsel %vm866_vm6, 1.0, %v2163_v5  ;;  %v1830_v28 = vsel %vm867_vm7, 1.0, %v2163_v5 }
  0x7b   : > { %2078 = vset.pattern.permute.xlu1 %v2160_v0  ;;  %2079 = vset.pattern.permute.xlu2 %v2161_v1 }
  0x7c   : > { %320 = vperm.xlu1 %2078, %v2282_v29   ;;  %573 = vperm.xlu2 %2079, %v528_v48   ;;  %v2362_v53 = vpop.permute.xlu2 %822 }
  0x7d   : > { %vm868_vm10 = vcmp.eq.s32.totalorder %v2379_v59, %v2362_v53  ;;  %vm869_vm11 = vcmp.eq.s32.totalorder %v2391_v62, %v2362_v53 }
  0x7e   : > { %2093 = vset.pattern.permute.xlu0 %v2162_v2  ;;  %v1831_v32 = vsel %vm868_vm10, 1.0, %v2163_v5  ;;  %v1832_v33 = vsel %vm869_vm11, 1.0, %v2163_v5 }
  0x84   : > { %305 = vperm.xlu1 %2078, %v265_v55   ;;  %2081 = vset.pattern.permute.xlu2 %v2160_v0 }
  0x85   : > { %308 = vperm.xlu2 %2081, %v2370_v57   ;;  %v2388_v61 = vpop.permute.xlu2 %537 }
  0x86   : > { %vm582_vm12 = vcmp.eq.s32.totalorder %v2379_v59, %v2388_v61  ;;  %vm583_vm13 = vcmp.eq.s32.totalorder %v2391_v62, %v2388_v61 }
  0x87   : > { %v1801_v38 = vsel %vm582_vm12, 1.0, %v2163_v5  ;;  %v1802_v39 = vsel %vm583_vm13, 1.0, %v2163_v5 }
  0x8a   : > { %v276_v3 = vpop.permute.xlu0 %275 }
  0x8b   : > { %vm322_vm0 = vcmp.eq.s32.totalorder %v2379_v59, %v276_v3  ;;  %vm323_vm1 = vcmp.eq.s32.totalorder %v2391_v62, %v276_v3 }
  0x8c   : > { %v1765_v6 = vsel %vm322_vm0, 1.0, %v2163_v5  ;;  %v1766_v7 = vsel %vm323_vm1, 1.0, %v2163_v5  ;;  %2082 = vset.pattern.permute.xlu1 %v2161_v1  ;;  %v532_v8 = vpop.permute.xlu1 %531 }
  0x8d   : > { %vm578_vm2 = vcmp.eq.s32.totalorder %v2379_v59, %v532_v8  ;;  %vm579_vm3 = vcmp.eq.s32.totalorder %v2391_v62, %v532_v8  ;;  %561 = vperm.xlu1 %2082, %v524_v63   ;;  %2083 = vset.pattern.permute.xlu2 %v2161_v1 }
  0x8e   : > { %v1797_v9 = vsel %vm578_vm2, 1.0, %v2163_v5  ;;  %v1798_v10 = vsel %vm579_vm3, 1.0, %v2163_v5  ;;  %564 = vperm.xlu2 %2083, %v525_v4   ;;  %v2408_v16 = vpop.permute.xlu2 %828  ;;  %v526_v4 = vadd.s32 50, %v267_v51 }
  0x8f   : > { %v754_v11 = vadd.f32 %v1797_v9, %v1765_v6  ;;  %v755_v12 = vadd.f32 %v1798_v10, %v1766_v7  ;;  %vm873_vm7 = vcmp.eq.s32.totalorder %v2391_v62, %v2408_v16 }
  0x91   : > { %v786_v13 = vpack.c.bf16 %v755_v12, %v754_v11 }
  0x92   : > { %v279_v14 = vpop.permute.xlu0 %278 }
  0x93   : > { %vm324_vm4 = vcmp.eq.s32.totalorder %v2379_v59, %v279_v14  ;;  %vm325_vm5 = vcmp.eq.s32.totalorder %v2391_v62, %v279_v14  ;;  %v978_v21 = vunpack.c.l.bf16 %v786_v13  ;;  %v979_v22 = vunpack.c.h.bf16 %v786_v13 }
  0x94   : > { %v1767_v18 = vsel %vm324_vm4, 1.0, %v2163_v5  ;;  %v1768_v19 = vsel %vm325_vm5, 1.0, %v2163_v5  ;;  %v535_v20 = vpop.permute.xlu1 %534  ;;  %vm872_vm4 = vcmp.eq.s32.totalorder %v2379_v59, %v2408_v16 }
  0x95   : > { %vm580_vm8 = vcmp.eq.s32.totalorder %v2379_v59, %v535_v20  ;;  %vm581_vm9 = vcmp.eq.s32.totalorder %v2391_v62, %v535_v20  ;;  %2085 = vset.pattern.permute.xlu1 %v2162_v2  ;;  %v1042_v30 = vadd.f32 %v1829_v27, %v978_v21  ;;  %v1043_v31 = vadd.f32 %v1830_v28, %v979_v22 }
  0x96   : > { %v1799_v23 = vsel %vm580_vm8, 1.0, %v2163_v5  ;;  %v1800_v24 = vsel %vm581_vm9, 1.0, %v2163_v5  ;;  %864 = vperm.xlu1 %2085, %v817_v15   ;;  %2086 = vset.pattern.permute.xlu2 %v2162_v2  ;;  %v1835_v22 = vsel %vm872_vm4, 1.0, %v2163_v5 }
  0x97   : > { %v756_v25 = vadd.f32 %v1799_v23, %v1767_v18  ;;  %v757_v26 = vadd.f32 %v1800_v24, %v1768_v19  ;;  %849 = vperm.xlu2 %2086, %v812_v17   ;;  %v2455_v42 = vpop.permute.xlu2 %290  ;;  %v1074_v46 = vpack.c.bf16 %v1043_v31, %v1042_v30  ;;  %v1836_v23 = vsel %vm873_vm7, 1.0, %v2163_v5 }
  0x98   : > { %vm332_vm12 = vcmp.eq.s32.totalorder %v2379_v59, %v2455_v42  ;;  %vm333_vm13 = vcmp.eq.s32.totalorder %v2391_v62, %v2455_v42 }
  0x99   : > { %v787_v29 = vpack.c.bf16 %v757_v26, %v756_v25  ;;  %v1138_v50 = vunpack.c.l.b16 %v1074_v46  ;;  %v1139_v55 = vunpack.c.h.b16 %v1074_v46  ;;  %v814_v25 = vadd.s32 100, %v267_v51 }
  0x9a   : > { %v282_v34 = vpop.permute.xlu0 %281 }
  0x9b   : > { %v980_v36 = vunpack.c.l.bf16 %v787_v29  ;;  %v981_v37 = vunpack.c.h.bf16 %v787_v29  ;;  %vm326_vm14 = vcmp.eq.s32.totalorder %v2379_v59, %v282_v34  ;;  %vm327_vm15 = vcmp.eq.s32.totalorder %v2391_v62, %v282_v34 }
  0x9c   : > { %v1769_v40 = vsel %vm326_vm14, 1.0, %v2163_v5  ;;  %v1770_v41 = vsel %vm327_vm15, 1.0, %v2163_v5  ;;  %v815_v29 = vadd.s32 100, %v2384_v60 }
  0x9d   : > { %v285_v43 = vpop.permute.xlu1 %284  ;;  %v1044_v44 = vadd.f32 %v1831_v32, %v980_v36  ;;  %v1045_v45 = vadd.f32 %v1832_v33, %v981_v37  ;;  %v758_v47 = vadd.f32 %v1801_v38, %v1769_v40  ;;  %v759_v48 = vadd.f32 %v1802_v39, %v1770_v41 }
  0x9e   : > { %852 = vperm.xlu1 %2085, %v813_v35   ;;  %vm328_vm0 = vcmp.eq.s32.totalorder %v2379_v59, %v285_v43  ;;  %vm329_vm1 = vcmp.eq.s32.totalorder %v2391_v62, %v285_v43 }
  0x9f   : > { %v1075_v49 = vpack.c.bf16 %v1045_v45, %v1044_v44  ;;  %2087 = vset.pattern.permute.xlu2 %v2160_v0  ;;  %v788_v57 = vpack.c.bf16 %v759_v48, %v758_v47  ;;  %v527_v0 = vadd.s32 50, %v2384_v60  ;;  %v1771_v52 = vsel %vm328_vm0, 1.0, %v2163_v5 }
  0xa0   : > { %311 = vperm.xlu2 %2087, %v267_v51   ;;  %v1772_v6 = vsel %vm329_vm1, 1.0, %v2163_v5  ;;  %v2473_v11 = vpop.permute.xlu2 %831  ;;  %v1776_v44 = vsel %vm333_vm13, 1.0, %v2163_v5 }
  0xa1   : > { %v1140_v53 = vunpack.c.l.b16 %v1075_v49  ;;  %v1141_v56 = vunpack.c.h.b16 %v1075_v49  ;;  %v982_v12 = vunpack.c.l.bf16 %v788_v57  ;;  %v983_v13 = vunpack.c.h.bf16 %v788_v57 }
  0xa2   : > { %vm874_vm14 = vcmp.eq.s32.totalorder %v2379_v59, %v2473_v11  ;;  %vm875_vm15 = vcmp.eq.s32.totalorder %v2391_v62, %v2473_v11 }
  0xa3   : > { %v541_v61 = vpop.permute.xlu0 %540  ;;  %v1170_v63 = vpack.c.b16 %v1140_v53, %v1138_v50  ;;  %v1171_v3 = vpack.c.b16 %v1141_v56, %v1139_v55  ;;  %v1837_v42 = vsel %vm874_vm14, 1.0, %v2163_v5  ;;  %v1838_v49 = vsel %vm875_vm15, 1.0, %v2163_v5 }
  0xa4   : > { %vm584_vm2 = vcmp.eq.s32.totalorder %v2379_v59, %v541_v61  ;;  %vm585_vm3 = vcmp.eq.s32.totalorder %v2391_v62, %v541_v61 }
  0xa5   : > { %v1803_v7 = vsel %vm584_vm2, 1.0, %v2163_v5  ;;  %v1804_v8 = vsel %vm585_vm3, 1.0, %v2163_v5  ;;  %1306 = vmatmul.bf16.vlgmr.msra.gmra.mxu0 %v1170_v63  ;;  %1355 = vmatmul.bf16.vlgmr.msra.gmra.mxu1 %v1171_v3 }
  0xa6   : > { %v760_v58 = vadd.f32 %v1803_v7, %v1771_v52  ;;  %v761_v9 = vadd.f32 %v1804_v8, %v1772_v6  ;;  %2089 = vset.pattern.permute.xlu1 %v2161_v1  ;;  %v826_v10 = vpop.permute.xlu1 %825 }
  0xa7   : > { %vm870_vm5 = vcmp.eq.s32.totalorder %v2379_v59, %v826_v10  ;;  %vm871_vm6 = vcmp.eq.s32.totalorder %v2391_v62, %v826_v10  ;;  %567 = vperm.xlu1 %2089, %v526_v4  }
  0xa8   : > { %v789_v14 = vpack.c.bf16 %v761_v9, %v760_v58  ;;  %v1833_v15 = vsel %vm870_vm5, 1.0, %v2163_v5  ;;  %v1834_v17 = vsel %vm871_vm6, 1.0, %v2163_v5  ;;  %2090 = vset.pattern.permute.xlu2 %v2161_v1 }
  0xa9   : > { %v1046_v18 = vadd.f32 %v1833_v15, %v982_v12  ;;  %v1047_v19 = vadd.f32 %v1834_v17, %v983_v13  ;;  %570 = vperm.xlu2 %2090, %v527_v0   ;;  %v297_v36 = vpop.permute.xlu2 %296 }
  0xaa   : > { %v984_v20 = vunpack.c.l.bf16 %v789_v14  ;;  %v985_v21 = vunpack.c.h.bf16 %v789_v14  ;;  %vm336_vm4 = vcmp.eq.s32.totalorder %v2379_v59, %v297_v36  ;;  %vm337_vm5 = vcmp.eq.s32.totalorder %v2391_v62, %v297_v36 }
  0xab   : > { %v544_v24 = vpop.permute.xlu0 %543  ;;  %v1076_v26 = vpack.c.bf16 %v1047_v19, %v1046_v18  ;;  %v1779_v19 = vsel %vm336_vm4, 1.0, %v2163_v5 }
  0xac   : > { %vm586_vm8 = vcmp.eq.s32.totalorder %v2379_v59, %v544_v24  ;;  %vm587_vm9 = vcmp.eq.s32.totalorder %v2391_v62, %v544_v24  ;;  %v1048_v1 = vadd.f32 %v1835_v22, %v984_v20  ;;  %v1049_v27 = vadd.f32 %v1836_v23, %v985_v21 }
  0xad   : > { %v1805_v30 = vsel %vm586_vm8, 1.0, %v2163_v5  ;;  %v1806_v31 = vsel %vm587_vm9, 1.0, %v2163_v5  ;;  %v1142_v32 = vunpack.c.l.b16 %v1076_v26  ;;  %v1143_v33 = vunpack.c.h.b16 %v1076_v26 }
  0xae   : > { %v1077_v28 = vpack.c.bf16 %v1049_v27, %v1048_v1  ;;  %v1780_v20 = vsel %vm337_vm5, 1.0, %v2163_v5 }
  0xaf   : > { %2091 = vset.pattern.permute.xlu1 %v2162_v2  ;;  %v288_v16 = vpop.permute.xlu1 %287 }
  0xb0   : > { %vm330_vm10 = vcmp.eq.s32.totalorder %v2379_v59, %v288_v16  ;;  %vm331_vm11 = vcmp.eq.s32.totalorder %v2391_v62, %v288_v16  ;;  %855 = vperm.xlu1 %2091, %v814_v25   ;;  %v1144_v34 = vunpack.c.l.b16 %v1077_v28  ;;  %v1145_v35 = vunpack.c.h.b16 %v1077_v28 }
  0xb1   : > { %v1773_v37 = vsel %vm330_vm10, 1.0, %v2163_v5  ;;  %v1774_v60 = vsel %vm331_vm11, 1.0, %v2163_v5  ;;  %2092 = vset.pattern.permute.xlu2 %v2162_v2  ;;  %v1775_v2 = vsel %vm332_vm12, 1.0, %v2163_v5 }
  0xb2   : > { %v762_v38 = vadd.f32 %v1805_v30, %v1773_v37  ;;  %v763_v39 = vadd.f32 %v1806_v31, %v1774_v60  ;;  %v1172_v40 = vpack.c.b16 %v1144_v34, %v1142_v32  ;;  %v1173_v41 = vpack.c.b16 %v1145_v35, %v1143_v33  ;;  %858 = vperm.xlu2 %2092, %v815_v29   ;;  %v553_v53 = vpop.permute.xlu2 %552 }
  0xb3   : > { %vm592_vm6 = vcmp.eq.s32.totalorder %v2379_v59, %v553_v53  ;;  %vm593_vm7 = vcmp.eq.s32.totalorder %v2391_v62, %v553_v53 }
  0xb4   : > { %v790_v43 = vpack.c.bf16 %v763_v39, %v762_v38  ;;  %v835_v46 = vpop.permute.xlu0 %834  ;;  %v1811_v21 = vsel %vm592_vm6, 1.0, %v2163_v5  ;;  %v1812_v22 = vsel %vm593_vm7, 1.0, %v2163_v5 }
  0xb5   : > { %1311 = vmatmul.bf16.gmra.mxu0 %v1172_v40  ;;  %1360 = vmatmul.bf16.gmra.mxu1 %v1173_v41  ;;  %vm876_vm2 = vcmp.eq.s32.totalorder %v2379_v59, %v835_v46  ;;  %vm877_vm3 = vcmp.eq.s32.totalorder %v2391_v62, %v835_v46  ;;  %v768_v24 = vadd.f32 %v1811_v21, %v1779_v19 }
  0xb6   : > { %v986_v47 = vunpack.c.l.bf16 %v790_v43  ;;  %v987_v48 = vunpack.c.h.bf16 %v790_v43  ;;  %v1839_v3 = vsel %vm876_vm2, 1.0, %v2163_v5  ;;  %v1840_v4 = vsel %vm877_vm3, 1.0, %v2163_v5 }
  0xb7   : > { %v769_v25 = vadd.f32 %v1812_v22, %v1780_v20 }
  0xb8   : > { %v547_v45 = vpop.permute.xlu1 %546  ;;  %v1050_v61 = vadd.f32 %v1837_v42, %v986_v47  ;;  %v1051_v63 = vadd.f32 %v1838_v49, %v987_v48 }
  0xb9   : > { %vm588_vm0 = vcmp.eq.s32.totalorder %v2379_v59, %v547_v45  ;;  %vm589_vm1 = vcmp.eq.s32.totalorder %v2391_v62, %v547_v45  ;;  %v793_v16 = vpack.c.bf16 %v769_v25, %v768_v24 }
  0xba   : > { %v1807_v51 = vsel %vm588_vm0, 1.0, %v2163_v5  ;;  %v1808_v50 = vsel %vm589_vm1, 1.0, %v2163_v5  ;;  %v1078_v58 = vpack.c.bf16 %v1051_v63, %v1050_v61 }
  0xbb   : > { %v764_v55 = vadd.f32 %v1807_v51, %v1775_v2  ;;  %v765_v56 = vadd.f32 %v1808_v50, %v1776_v44  ;;  %v2518_v9 = vpop.permute.xlu2 %299  ;;  %v992_v39 = vunpack.c.l.bf16 %v793_v16  ;;  %v993_v40 = vunpack.c.h.bf16 %v793_v16 }
  0xbc   : > { %v1146_v11 = vunpack.c.l.b16 %v1078_v58  ;;  %v1147_v13 = vunpack.c.h.b16 %v1078_v58  ;;  %v838_v18 = vpop.permute.xlu0 %837  ;;  %vm338_vm4 = vcmp.eq.s32.totalorder %v2379_v59, %v2518_v9  ;;  %vm339_vm5 = vcmp.eq.s32.totalorder %v2391_v62, %v2518_v9 }
  0xbd   : > { %v791_v57 = vpack.c.bf16 %v765_v56, %v764_v55  ;;  %vm878_vm12 = vcmp.eq.s32.totalorder %v2379_v59, %v838_v18  ;;  %vm879_vm13 = vcmp.eq.s32.totalorder %v2391_v62, %v838_v18 }
  0xbe   : > { %v1841_v34 = vsel %vm878_vm12, 1.0, %v2163_v5  ;;  %v1842_v35 = vsel %vm879_vm13, 1.0, %v2163_v5 }
  0xbf   : > { %v988_v0 = vunpack.c.l.bf16 %v791_v57  ;;  %v989_v52 = vunpack.c.h.bf16 %v791_v57 }
  0xc1   : > { %v1052_v6 = vadd.f32 %v1839_v3, %v988_v0  ;;  %v1053_v7 = vadd.f32 %v1840_v4, %v989_v52  ;;  %v294_v8 = vpop.permute.xlu1 %293 }
  0xc2   : > { %vm334_vm8 = vcmp.eq.s32.totalorder %v2379_v59, %v294_v8  ;;  %vm335_vm9 = vcmp.eq.s32.totalorder %v2391_v62, %v294_v8 }
  0xc3   : > { %v1079_v10 = vpack.c.bf16 %v1053_v7, %v1052_v6  ;;  %v1777_v26 = vsel %vm334_vm8, 1.0, %v2163_v5  ;;  %v1778_v1 = vsel %vm335_vm9, 1.0, %v2163_v5  ;;  %v1781_v6 = vsel %vm338_vm4, 1.0, %v2163_v5 }
  0xc4   : > { %v559_v29 = vpop.permute.xlu2 %558  ;;  %v1782_v7 = vsel %vm339_vm5, 1.0, %v2163_v5 }
  0xc5   : > { %v1148_v12 = vunpack.c.l.b16 %v1079_v10  ;;  %v1149_v14 = vunpack.c.h.b16 %v1079_v10  ;;  %v303_v33 = vpop.permute.xlu0 %302  ;;  %vm596_vm14 = vcmp.eq.s32.totalorder %v2379_v59, %v559_v29  ;;  %vm597_vm15 = vcmp.eq.s32.totalorder %v2391_v62, %v559_v29 }
  0xc6   : > { %vm340_vm0 = vcmp.eq.s32.totalorder %v2379_v59, %v303_v33  ;;  %vm341_vm1 = vcmp.eq.s32.totalorder %v2391_v62, %v303_v33  ;;  %v1815_v43 = vsel %vm596_vm14, 1.0, %v2163_v5  ;;  %v1816_v2 = vsel %vm597_vm15, 1.0, %v2163_v5 }
  0xc7   : > { %v1174_v15 = vpack.c.b16 %v1148_v12, %v1146_v11  ;;  %v1175_v17 = vpack.c.b16 %v1149_v14, %v1147_v13  ;;  %v1783_v46 = vsel %vm340_vm0, 1.0, %v2163_v5  ;;  %v1784_v47 = vsel %vm341_vm1, 1.0, %v2163_v5 }
  0xc8   : > { %v772_v50 = vadd.f32 %v1815_v43, %v1783_v46  ;;  %v773_v53 = vadd.f32 %v1816_v2, %v1784_v47  ;;  %v2595_v2 = vld [vmem:[%s2836_s2 + $0x28] sm:$0xff] }
  0xc9   : > { %1316 = vmatmul.bf16.gmra.mxu0 %v1174_v15  ;;  %1365 = vmatmul.bf16.gmra.mxu1 %v1175_v17 }
  0xca   : > { %v550_v23 = vpop.permute.xlu1 %549  ;;  %v795_v3 = vpack.c.bf16 %v773_v53, %v772_v50 }
  0xcb   : > { %vm590_vm10 = vcmp.eq.s32.totalorder %v2379_v59, %v550_v23  ;;  %vm591_vm11 = vcmp.eq.s32.totalorder %v2391_v62, %v550_v23 }
  0xcc   : > { %v1809_v27 = vsel %vm590_vm10, 1.0, %v2163_v5  ;;  %v1810_v28 = vsel %vm591_vm11, 1.0, %v2163_v5  ;;  %v996_v11 = vunpack.c.l.bf16 %v795_v3  ;;  %v997_v12 = vunpack.c.h.bf16 %v795_v3 }
  0xcd   : > { %v766_v30 = vadd.f32 %v1809_v27, %v1777_v26  ;;  %v767_v31 = vadd.f32 %v1810_v28, %v1778_v1  ;;  %v847_v49 = vpop.permute.xlu2 %846  ;;  %v318_v27 = vpop.permute.xlu0 %317 }
  0xce   : > { %vm884_vm8 = vcmp.eq.s32.totalorder %v2379_v59, %v847_v49  ;;  %vm885_vm9 = vcmp.eq.s32.totalorder %v2391_v62, %v847_v49  ;;  %vm350_vm12 = vcmp.eq.s32.totalorder %v2379_v59, %v318_v27  ;;  %vm351_vm13 = vcmp.eq.s32.totalorder %v2391_v62, %v318_v27 }
  0xcf   : > { %v792_v32 = vpack.c.bf16 %v767_v31, %v766_v30  ;;  %v1847_v14 = vsel %vm884_vm8, 1.0, %v2163_v5  ;;  %v1848_v15 = vsel %vm885_vm9, 1.0, %v2163_v5  ;;  %v2575_v30 = vld [vmem:[%s2836_s2 + $0x38] sm:$0xff] }
  0xd0   : > { %v1060_v18 = vadd.f32 %v1847_v14, %v996_v11  ;;  %v1061_v19 = vadd.f32 %v1848_v15, %v997_v12  ;;  %1472 = vmatpush.bf16.msra.mxu2 %v2575_v30  ;;  %v2641_v11 = vld [vmem:[%s2836_s2 + $0x10] sm:$0xff] }
  0xd1   : > { %v990_v36 = vunpack.c.l.bf16 %v792_v32  ;;  %v991_v37 = vunpack.c.h.bf16 %v792_v32 }
  0xd2   : > { %v1083_v1 = vpack.c.bf16 %v1061_v19, %v1060_v18 }
  0xd3   : > { %v1054_v60 = vadd.f32 %v1841_v34, %v990_v36  ;;  %v1055_v38 = vadd.f32 %v1842_v35, %v991_v37  ;;  %v841_v41 = vpop.permute.xlu1 %840  ;;  %v2585_v37 = vld [vmem:[%s2836_s2 + $0x30] sm:$0xff] }
  0xd4   : > { %vm880_vm2 = vcmp.eq.s32.totalorder %v2379_v59, %v841_v41  ;;  %vm881_vm3 = vcmp.eq.s32.totalorder %v2391_v62, %v841_v41  ;;  %v1156_v16 = vunpack.c.l.b16 %v1083_v1  ;;  %v1157_v33 = vunpack.c.h.b16 %v1083_v1  ;;  %1473 = vmatpush.bf16.msra.mxu2 %v2585_v37 }
  0xd5   : > { %v1843_v44 = vsel %vm880_vm2, 1.0, %v2163_v5  ;;  %v1844_v45 = vsel %vm881_vm3, 1.0, %v2163_v5  ;;  %v1080_v51 = vpack.c.bf16 %v1055_v38, %v1054_v60  ;;  %v1793_v60 = vsel %vm350_vm12, 1.0, %v2163_v5 }
  0xd6   : > { %v1056_v48 = vadd.f32 %v1843_v44, %v992_v39  ;;  %v1057_v42 = vadd.f32 %v1844_v45, %v993_v40  ;;  %v574_v13 = vpop.permute.xlu2 %573  ;;  %v1794_v38 = vsel %vm351_vm13, 1.0, %v2163_v5  ;;  %v577_v41 = vpop.permute.xlu0 %576 }
  0xd7   : > { %v1150_v56 = vunpack.c.l.b16 %v1080_v51  ;;  %v1151_v61 = vunpack.c.h.b16 %v1080_v51  ;;  %vm606_vm14 = vcmp.eq.s32.totalorder %v2379_v59, %v574_v13  ;;  %vm607_vm15 = vcmp.eq.s32.totalorder %v2391_v62, %v574_v13 }
  0xd8   : > { %v1081_v55 = vpack.c.bf16 %v1057_v42, %v1056_v48  ;;  %v1825_v39 = vsel %vm606_vm14, 1.0, %v2163_v5  ;;  %v1826_v40 = vsel %vm607_vm15, 1.0, %v2163_v5  ;;  %1474 = vmatpush.bf16.msra.mxu2 %v2595_v2  ;;  %vm608_vm0 = vcmp.eq.s32.totalorder %v2379_v59, %v577_v41  ;;  %v2603_v48 = vld [vmem:[%s2836_s2 + $0x20] sm:$0xff] }
  0xd9   : > { %v782_v44 = vadd.f32 %v1825_v39, %v1793_v60  ;;  %v783_v45 = vadd.f32 %v1826_v40, %v1794_v38  ;;  %vm609_vm1 = vcmp.eq.s32.totalorder %v2391_v62, %v577_v41  ;;  %v1827_v49 = vsel %vm608_vm0, 1.0, %v2163_v5 }
  0xda   : > { %v1152_v57 = vunpack.c.l.b16 %v1081_v55  ;;  %v1153_v63 = vunpack.c.h.b16 %v1081_v55  ;;  %v1828_v51 = vsel %vm609_vm1, 1.0, %v2163_v5 }
  0xdb   : > { %v800_v47 = vpack.c.bf16 %v783_v45, %v782_v44 }
  0xdc   : > { %v556_v4 = vpop.permute.xlu1 %555  ;;  %v1176_v0 = vpack.c.b16 %v1152_v57, %v1150_v56  ;;  %v1177_v52 = vpack.c.b16 %v1153_v63, %v1151_v61  ;;  %1475 = vmatpush.bf16.msra.mxu2 %v2603_v48  ;;  %v2617_v61 = vld [vmem:[%s2836_s2 + $0x18] sm:$0xff] }
  0xdd   : > { %vm594_vm6 = vcmp.eq.s32.totalorder %v2379_v59, %v556_v4  ;;  %vm595_vm7 = vcmp.eq.s32.totalorder %v2391_v62, %v556_v4  ;;  %v1006_v56 = vunpack.c.l.bf16 %v800_v47  ;;  %v1007_v57 = vunpack.c.h.bf16 %v800_v47 }
  0xde   : > { %v1813_v8 = vsel %vm594_vm6, 1.0, %v2163_v5  ;;  %v1814_v58 = vsel %vm595_vm7, 1.0, %v2163_v5  ;;  %1321 = vmatmul.bf16.gmra.mxu0 %v1176_v0  ;;  %1370 = vmatmul.bf16.gmra.mxu1 %v1177_v52 }
  0xdf   : > { %v770_v9 = vadd.f32 %v1813_v8, %v1781_v6  ;;  %v771_v10 = vadd.f32 %v1814_v58, %v1782_v7  ;;  %v2570_v28 = vpop.permute.xlu2 %308  ;;  %v862_v50 = vpop.permute.xlu0 %861 }
  0xe0   : > { %vm344_vm4 = vcmp.eq.s32.totalorder %v2379_v59, %v2570_v28  ;;  %vm345_vm5 = vcmp.eq.s32.totalorder %v2391_v62, %v2570_v28  ;;  %vm894_vm8 = vcmp.eq.s32.totalorder %v2379_v59, %v862_v50  ;;  %vm895_vm9 = vcmp.eq.s32.totalorder %v2391_v62, %v862_v50  ;;  %1476 = vmatpush.bf16.msra.mxu2 %v2617_v61 }
  0xe1   : > { %v794_v17 = vpack.c.bf16 %v771_v10, %v770_v9  ;;  %v1857_v8 = vsel %vm894_vm8, 1.0, %v2163_v5  ;;  %v1858_v58 = vsel %vm895_vm9, 1.0, %v2163_v5  ;;  %v1787_v12 = vsel %vm344_vm4, 1.0, %v2163_v5 }
  0xe2   : > { %v1788_v14 = vsel %vm345_vm5, 1.0, %v2163_v5  ;;  %v1070_v19 = vadd.f32 %v1857_v8, %v1006_v56 }
  0xe3   : > { %v994_v21 = vunpack.c.l.bf16 %v794_v17  ;;  %v995_v22 = vunpack.c.h.bf16 %v794_v17 }
  0xe4   : > { %1477 = vmatpush.bf16.msra.mxu2 %v2641_v11 }
  0xe5   : > { %v844_v20 = vpop.permute.xlu1 %843 }
  0xe6   : > { %vm882_vm10 = vcmp.eq.s32.totalorder %v2379_v59, %v844_v20  ;;  %vm883_vm11 = vcmp.eq.s32.totalorder %v2391_v62, %v844_v20  ;;  %v1071_v20 = vadd.f32 %v1858_v58, %v1007_v57 }
  0xe7   : > { %v1845_v23 = vsel %vm882_vm10, 1.0, %v2163_v5  ;;  %v1846_v24 = vsel %vm883_vm11, 1.0, %v2163_v5 }
  0xe8   : > { %v1058_v25 = vadd.f32 %v1845_v23, %v994_v21  ;;  %v1059_v26 = vadd.f32 %v1846_v24, %v995_v22  ;;  %v565_v43 = vpop.permute.xlu2 %564  ;;  %v2659_v22 = vld [vmem:[%s2836_s2 + $0x8] sm:$0xff] }
  0xe9   : > { %vm600_vm12 = vcmp.eq.s32.totalorder %v2379_v59, %v565_v43  ;;  %vm601_vm13 = vcmp.eq.s32.totalorder %v2391_v62, %v565_v43  ;;  %1478 = vmatpush.bf16.msra.mxu2 %v2659_v22 }
  0xea   : > { %v1082_v29 = vpack.c.bf16 %v1059_v26, %v1058_v25  ;;  %v1819_v17 = vsel %vm600_vm12, 1.0, %v2163_v5  ;;  %v1820_v18 = vsel %vm601_vm13, 1.0, %v2163_v5 }
  0xeb   : > { %v776_v23 = vadd.f32 %v1819_v17, %v1787_v12  ;;  %v777_v24 = vadd.f32 %v1820_v18, %v1788_v14 }
  0xec   : > { %v1154_v31 = vunpack.c.l.b16 %v1082_v29  ;;  %v1155_v32 = vunpack.c.h.b16 %v1082_v29  ;;  %v2670_v29 = vpack.c.bf16 %v1071_v20, %v1070_v19 }
  0xee   : > { %v321_v34 = vpop.permute.xlu1 %320  ;;  %v1178_v35 = vpack.c.b16 %v1156_v16, %v1154_v31  ;;  %v1179_v36 = vpack.c.b16 %v1157_v33, %v1155_v32  ;;  %v1166_v40 = vunpack.c.l.b16 %v2670_v29 }
  0xef   : > { %vm352_vm2 = vcmp.eq.s32.totalorder %v2379_v59, %v321_v34  ;;  %vm353_vm3 = vcmp.eq.s32.totalorder %v2391_v62, %v321_v34  ;;  %v315_v34 = vpop.permute.xlu0 %314 }
  0xf0   : > { %1326 = vmatmul.bf16.gmra.mxu0 %v1178_v35  ;;  %1375 = vmatmul.bf16.gmra.mxu1 %v1179_v36  ;;  %v1795_v53 = vsel %vm352_vm2, 1.0, %v2163_v5  ;;  %v1796_v55 = vsel %vm353_vm3, 1.0, %v2163_v5  ;;  %v2675_v35 = vld [vmem:[%s2836_s2] sm:$0xff]  ;;  %v797_v36 = vpack.c.bf16 %v777_v24, %v776_v23  ;;  %vm348_vm2 = vcmp.eq.s32.totalorder %v2379_v59, %v315_v34 }
  0xf1   : > { %v2607_v42 = vpop.permute.xlu2 %849  ;;  %v784_v3 = vadd.f32 %v1827_v49, %v1795_v53  ;;  %v785_v4 = vadd.f32 %v1828_v51, %v1796_v55  ;;  %1479 = vmatpush.bf16.msra.mxu2 %v2675_v35  ;;  %vm349_vm3 = vcmp.eq.s32.totalorder %v2391_v62, %v315_v34  ;;  %v1791_v51 = vsel %vm348_vm2, 1.0, %v2163_v5 }
  0xf2   : > { %vm886_vm14 = vcmp.eq.s32.totalorder %v2379_v59, %v2607_v42  ;;  %vm887_vm15 = vcmp.eq.s32.totalorder %v2391_v62, %v2607_v42  ;;  %v1001_v47 = vunpack.c.h.bf16 %v797_v36  ;;  %v1792_v56 = vsel %vm349_vm3, 1.0, %v2163_v5 }
  0xf3   : > { %v801_v15 = vpack.c.bf16 %v785_v4, %v784_v3  ;;  %v1849_v60 = vsel %vm886_vm14, 1.0, %v2163_v5  ;;  %v1850_v38 = vsel %vm887_vm15, 1.0, %v2163_v5  ;;  %vm1645_vm2 = vcmask 1041409  }
  0xf4   : > { %vm1647_vm3 = vcmask 1042434  }
  0xf5   : > { %v1008_v26 = vunpack.c.l.bf16 %v801_v15  ;;  %v1009_v1 = vunpack.c.h.bf16 %v801_v15 }
  0xf6   : > { %v306_v46 = vpop.permute.xlu1 %305 }
  0xf7   : > { %vm342_vm6 = vcmp.eq.s32.totalorder %v2379_v59, %v306_v46  ;;  %vm343_vm7 = vcmp.eq.s32.totalorder %v2391_v62, %v306_v46  ;;  %v1000_v46 = vunpack.c.l.bf16 %v797_v36 }
  0xf8   : > { %v1785_v6 = vsel %vm342_vm6, 1.0, %v2163_v5  ;;  %v1786_v7 = vsel %vm343_vm7, 1.0, %v2163_v5 }
  0xfa   : > { %v2647_v13 = vpop.permute.xlu2 %311 }
  0xfb   : > { %vm346_vm8 = vcmp.eq.s32.totalorder %v2379_v59, %v2647_v13  ;;  %vm347_vm9 = vcmp.eq.s32.totalorder %v2391_v62, %v2647_v13 }
  0xfc   : > { %v1789_v17 = vsel %vm346_vm8, 1.0, %v2163_v5  ;;  %v1790_v18 = vsel %vm347_vm9, 1.0, %v2163_v5  ;;  %vm1657_vm8 = vcmask 1047559  }
  0xff   : > { %v562_v63 = vpop.permute.xlu1 %561 }
 0x100   : > { %vm598_vm10 = vcmp.eq.s32.totalorder %v2379_v59, %v562_v63  ;;  %vm599_vm11 = vcmp.eq.s32.totalorder %v2391_v62, %v562_v63 }
 0x101   : > { %v1817_v0 = vsel %vm598_vm10, 1.0, %v2163_v5  ;;  %v1818_v52 = vsel %vm599_vm11, 1.0, %v2163_v5 }
 0x102   : > { %v774_v9 = vadd.f32 %v1817_v0, %v1785_v6  ;;  %v775_v10 = vadd.f32 %v1818_v52, %v1786_v7 }
 0x103   : > { %v571_v41 = vpop.permute.xlu2 %570 }
 0x104   : > { %v796_v21 = vpack.c.bf16 %v775_v10, %v774_v9  ;;  %vm604_vm4 = vcmp.eq.s32.totalorder %v2379_v59, %v571_v41  ;;  %vm605_vm5 = vcmp.eq.s32.totalorder %v2391_v62, %v571_v41 }
 0x105   : > { %v1823_v55 = vsel %vm604_vm4, 1.0, %v2163_v5  ;;  %v1824_v3 = vsel %vm605_vm5, 1.0, %v2163_v5  ;;  %vm1649_vm4 = vcmask 1043459   ;;  %vm1651_vm5 = vcmask 1044484  }
 0x106   : > { %v998_v31 = vunpack.c.l.bf16 %v796_v21  ;;  %v999_v16 = vunpack.c.h.bf16 %v796_v21  ;;  %v780_v52 = vadd.f32 %v1823_v55, %v1791_v51  ;;  %v781_v6 = vadd.f32 %v1824_v3, %v1792_v56 }
 0x108   : > { %v865_v25 = vpop.permute.xlu1 %864  ;;  %v1062_v43 = vadd.f32 %v1849_v60, %v998_v31  ;;  %v1063_v44 = vadd.f32 %v1850_v38, %v999_v16 }
 0x109   : > { %vm896_vm0 = vcmp.eq.s32.totalorder %v2379_v59, %v865_v25  ;;  %vm897_vm1 = vcmp.eq.s32.totalorder %v2391_v62, %v865_v25 }
 0x10a   : > { %v1859_v27 = vsel %vm896_vm0, 1.0, %v2163_v5  ;;  %v1860_v28 = vsel %vm897_vm1, 1.0, %v2163_v5  ;;  %v1084_v4 = vpack.c.bf16 %v1063_v44, %v1062_v43  ;;  %vm1558_vm1 = vcmask 130048  }
 0x10b   : > { %v1072_v32 = vadd.f32 %v1859_v27, %v1008_v26  ;;  %v1073_v33 = vadd.f32 %v1860_v28, %v1009_v1  ;;  %v1167_v1 = vunpack.c.h.b16 %v2670_v29 }
 0x10c   : > { %v1158_v7 = vunpack.c.l.b16 %v1084_v4  ;;  %v1159_v58 = vunpack.c.h.b16 %v1084_v4  ;;  %v859_v15 = vpop.permute.xlu2 %858 }
 0x10d   : > { %v2685_v39 = vpack.c.bf16 %v1073_v33, %v1072_v32  ;;  %vm892_vm12 = vcmp.eq.s32.totalorder %v2379_v59, %v859_v15  ;;  %vm893_vm13 = vcmp.eq.s32.totalorder %v2391_v62, %v859_v15 }
 0x10e   : > { %v1855_v25 = vsel %vm892_vm12, 1.0, %v2163_v5  ;;  %v1856_v26 = vsel %vm893_vm13, 1.0, %v2163_v5 }
 0x10f   : > { %v1168_v45 = vunpack.c.l.b16 %v2685_v39  ;;  %v1169_v21 = vunpack.c.h.b16 %v2685_v39 }
 0x110   : > { %v853_v42 = vpop.permute.xlu1 %852 }
 0x111   : > { %vm888_vm6 = vcmp.eq.s32.totalorder %v2379_v59, %v853_v42  ;;  %vm889_vm7 = vcmp.eq.s32.totalorder %v2391_v62, %v853_v42  ;;  %v1184_v49 = vpack.c.b16 %v1168_v45, %v1166_v40  ;;  %v1185_v28 = vpack.c.b16 %v1169_v21, %v1167_v1 }
 0x112   : > { %v1851_v50 = vsel %vm888_vm6, 1.0, %v2163_v5  ;;  %v1852_v53 = vsel %vm889_vm7, 1.0, %v2163_v5  ;;  %vm1653_vm6 = vcmask 1045509   ;;  %vm1655_vm7 = vcmask 1046534  }
 0x113   : > { %v1064_v57 = vadd.f32 %v1851_v50, %v1000_v46  ;;  %v1065_v63 = vadd.f32 %v1852_v53, %v1001_v47  ;;  %1341 = vmatmul.bf16.vlgmr.msra.gmra.mxu3 %v1184_v49 }
 0x114   : > { %2003 = vmatpush.bf16.msra.mxu3 %v2575_v30  ;;  %v799_v30 = vpack.c.bf16 %v781_v6, %v780_v52 }
 0x115   : > { %v1085_v0 = vpack.c.bf16 %v1065_v63, %v1064_v57 }
 0x116   : > { %v1004_v23 = vunpack.c.l.bf16 %v799_v30  ;;  %v1005_v24 = vunpack.c.h.bf16 %v799_v30 }
 0x117   : > { %v1160_v8 = vunpack.c.l.b16 %v1085_v0  ;;  %v1161_v9 = vunpack.c.h.b16 %v1085_v0 }
 0x118   : > { %2004 = vmatpush.bf16.msra.mxu3 %v2585_v37  ;;  %v1068_v31 = vadd.f32 %v1855_v25, %v1004_v23  ;;  %v1069_v16 = vadd.f32 %v1856_v26, %v1005_v24 }
 0x119   : > { %v568_v10 = vpop.permute.xlu1 %567  ;;  %v1180_v12 = vpack.c.b16 %v1160_v8, %v1158_v7  ;;  %v1181_v14 = vpack.c.b16 %v1161_v9, %v1159_v58 }
 0x11a   : > { %vm602_vm10 = vcmp.eq.s32.totalorder %v2379_v59, %v568_v10  ;;  %vm603_vm11 = vcmp.eq.s32.totalorder %v2391_v62, %v568_v10 }
 0x11b   : > { %v1821_v19 = vsel %vm602_vm10, 1.0, %v2163_v5  ;;  %v1822_v20 = vsel %vm603_vm11, 1.0, %v2163_v5  ;;  %1331 = vmatmul.bf16.gmra.mxu0 %v1180_v12  ;;  %1380 = vmatmul.bf16.gmra.mxu1 %v1181_v14 }
 0x11c   : > { %v778_v37 = vadd.f32 %v1821_v19, %v1789_v17  ;;  %v779_v13 = vadd.f32 %v1822_v20, %v1790_v18  ;;  %2005 = vmatpush.bf16.msra.mxu3 %v2595_v2 }
 0x11e   : > { %v798_v27 = vpack.c.bf16 %v779_v13, %v778_v37 }
 0x120   : > { %2006 = vmatpush.bf16.msra.mxu3 %v2603_v48  ;;  %v1002_v2 = vunpack.c.l.bf16 %v798_v27  ;;  %v1003_v36 = vunpack.c.h.bf16 %v798_v27  ;;  %v1087_v48 = vpack.c.bf16 %v1069_v16, %v1068_v31 }
 0x122   : > { %v1307_v32 = vpop.f32.mrf.mxu0  ;;  %v1356_v33 = vpop.f32.mrf.mxu1  ;;  %v1164_v45 = vunpack.c.l.b16 %v1087_v48 }
 0x123   : > { %v856_v34 = vpop.permute.xlu1 %855  ;;  %1390 = vmatmul.bf16.vlgmr.msrb.gmra.mxu3 %v1185_v28  ;;  %v1357_v47 = vadd.f32 %v1356_v33, %v1307_v32 }
 0x124   : > { %vm890_vm14 = vcmp.eq.s32.totalorder %v2379_v59, %v856_v34  ;;  %vm891_vm15 = vcmp.eq.s32.totalorder %v2391_v62, %v856_v34  ;;  %2007 = vmatpush.bf16.msra.mxu3 %v2617_v61  ;;  %v1165_v59 = vunpack.c.h.b16 %v1087_v48 }
 0x125   : > { %v1853_v29 = vsel %vm890_vm14, 1.0, %v2163_v5  ;;  %v1854_v60 = vsel %vm891_vm15, 1.0, %v2163_v5 }
 0x126   : > { %v1066_v38 = vadd.f32 %v1853_v29, %v1002_v2  ;;  %v1067_v39 = vadd.f32 %v1854_v60, %v1003_v36 }
 0x128   : > { %v1086_v40 = vpack.c.bf16 %v1067_v39, %v1066_v38  ;;  %2008 = vmatpush.bf16.msra.mxu3 %v2641_v11  ;;  %v2735_v38 = vld [vmem:[%s2837_s3] ss:$0 sm:$0xff]  ;;  %v1538_v39 = vshrl.u32 %v271_v54, 7 }
 0x12a   : > { %v1309_v41 = vpop.f32.mrf.mxu0  ;;  %v1358_v43 = vpop.f32.mrf.mxu1  ;;  %v1162_v44 = vunpack.c.l.b16 %v1086_v40  ;;  %v1163_v46 = vunpack.c.h.b16 %v1086_v40 }
 0x12b   : > { %v1359_v62 = vadd.f32 %v1358_v43, %v1309_v41  ;;  %v2739_v43 = vadd.s32 8, %v1538_v39 }
 0x12c   : > { %v1182_v42 = vpack.c.b16 %v1164_v45, %v1162_v44  ;;  %v1183_v61 = vpack.c.b16 %v1165_v59, %v1163_v46  ;;  %2009 = vmatpush.bf16.msra.mxu3 %v2659_v22 }
 0x12d   : > { %v1396_v49 = vpack.c.bf16 %v1359_v62, %v1357_v47  ;;  %vm1541_vm0 = vcmp.lt.s32.totalorder %v2739_v43, 14 }
 0x12e   : > { %1336 = vmatmul.bf16.gmra.mxu0 %v1182_v42  ;;  %1385 = vmatmul.bf16.gmra.mxu1 %v1183_v61 }
 0x12f   : > { %1480 = vmatmul.bf16.vlgmr.msra.gmra.mxu2 %v1396_v49 }
 0x130   : > { %2010 = vmatpush.bf16.msra.mxu3 %v2675_v35 }
 0x132   : > { %v1312_v5 = vpop.f32.mrf.mxu0  ;;  %v1361_v11 = vpop.f32.mrf.mxu1 }
 0x133   : > { %v1362_v53 = vadd.f32 %v1361_v11, %v1312_v5 }
 0x13a   : > { %v1314_v51 = vpop.f32.mrf.mxu0  ;;  %v1363_v50 = vpop.f32.mrf.mxu1 }
 0x13b   : > { %v1364_v55 = vadd.f32 %v1363_v50, %v1314_v51 }
 0x13d   : > { %v1397_v56 = vpack.c.bf16 %v1364_v55, %v1362_v53 }
 0x13f   : > { %1485 = vmatmul.bf16.gmra.mxu2 %v1397_v56 }
 0x146   : > { %v1317_v57 = vpop.f32.mrf.mxu0  ;;  %v1366_v63 = vpop.f32.mrf.mxu1 }
 0x147   : > { %v1367_v0 = vadd.f32 %v1366_v63, %v1317_v57 }
 0x14e   : > { %v1319_v3 = vpop.f32.mrf.mxu0  ;;  %v1368_v4 = vpop.f32.mrf.mxu1 }
 0x14f   : > { %v1369_v22 = vadd.f32 %v1368_v4, %v1319_v3 }
 0x151   : > { %v1398_v52 = vpack.c.bf16 %v1369_v22, %v1367_v0 }
 0x153   : > { %1490 = vmatmul.bf16.gmra.mxu2 %v1398_v52 }
 0x15b   : > { %v1322_v6 = vpop.f32.mrf.mxu0  ;;  %v1371_v7 = vpop.f32.mrf.mxu1 }
 0x15c   : > { %v1372_v58 = vadd.f32 %v1371_v7, %v1322_v6 }
 0x163   : > { %v1324_v8 = vpop.f32.mrf.mxu0  ;;  %v1373_v35 = vpop.f32.mrf.mxu1 }
 0x164   : > { %v1374_v9 = vadd.f32 %v1373_v35, %v1324_v8 }
 0x166   : > { %v1399_v10 = vpack.c.bf16 %v1374_v9, %v1372_v58 }
 0x168   : > { %1495 = vmatmul.bf16.gmra.mxu2 %v1399_v10 }
 0x16d   : > { %v1327_v12 = vpop.f32.mrf.mxu0  ;;  %v1376_v14 = vpop.f32.mrf.mxu1 }
 0x16e   : > { %v1377_v17 = vadd.f32 %v1376_v14, %v1327_v12 }
 0x175   : > { %v1329_v15 = vpop.f32.mrf.mxu0  ;;  %v1378_v30 = vpop.f32.mrf.mxu1 }
 0x176   : > { %v1379_v18 = vadd.f32 %v1378_v30, %v1329_v15 }
 0x178   : > { %v1400_v19 = vpack.c.bf16 %v1379_v18, %v1377_v17 }
 0x17a   : > { %1500 = vmatmul.bf16.gmra.mxu2 %v1400_v19 }
 0x196   : > { %v1342_v20 = vpop.f32.mrf.mxu3 }
 0x198   : > { %v1332_v37 = vpop.f32.mrf.mxu0  ;;  %v1381_v13 = vpop.f32.mrf.mxu1 }
 0x199   : > { %v1382_v25 = vadd.f32 %v1381_v13, %v1332_v37 }
 0x19e   : > { %v1344_v21 = vpop.f32.mrf.mxu3 }
 0x1a0   : > { %v1334_v23 = vpop.f32.mrf.mxu0  ;;  %v1383_v24 = vpop.f32.mrf.mxu1 }
 0x1a1   : > { %v1384_v26 = vadd.f32 %v1383_v24, %v1334_v23 }
 0x1a3   : > { %v1401_v1 = vpack.c.bf16 %v1384_v26, %v1382_v25 }
 0x1a5   : > { %1505 = vmatmul.bf16.gmra.mxu2 %v1401_v1 }
 0x1a6   : > { %v1391_v27 = vpop.f32.mrf.mxu3 }
 0x1a7   : > { %v1392_v32 = vadd.f32 %v1391_v27, %v1342_v20 }
 0x1ab   : > { %v1337_v28 = vpop.f32.mrf.mxu0  ;;  %v1386_v31 = vpop.f32.mrf.mxu1 }
 0x1ac   : > { %v1387_v60 = vadd.f32 %v1386_v31, %v1337_v28 }
 0x1ae   : > { %v1393_v16 = vpop.f32.mrf.mxu3 }
 0x1af   : > { %v1394_v33 = vadd.f32 %v1393_v16, %v1344_v21 }
 0x1b1   : > { %v1403_v34 = vpack.c.bf16 %v1394_v33, %v1392_v32 }
 0x1b2   : > { %v1481_v2 = vpop.f32.mrf.mxu2 }
 0x1b3   : > { %v1339_v36 = vpop.f32.mrf.mxu0  ;;  %v1388_v29 = vpop.f32.mrf.mxu1  ;;  %1515 = vmatmul.bf16.vlgmr.msra.gmra.mxu3 %v1403_v34  ;;  %v1482_v41 = vadd.f32 %v2735_v38, %v1481_v2 }
 0x1b4   : > { %v1389_v48 = vadd.f32 %v1388_v29, %v1339_v36 }
 0x1b5   : > { %v1521_v46 = vmax.f32 %v1482_v41, 0.0 }
 0x1b6   : > { %v1402_v40 = vpack.c.bf16 %v1389_v48, %v1387_v60 }
 0x1b7   : > { %v1559_v62 = vsel %vm1558_vm1, %v1521_v46, -inf }
 0x1b8   : > { %1510 = vmatmul.bf16.gmra.mxu2 %v1402_v40 }
 0x1ba   : > { %v1483_v44 = vpop.f32.mrf.mxu2 }
 0x1bb   : > { %v1484_v45 = vadd.f32 %v2735_v38, %v1483_v44 }
 0x1bd   : > { %v1522_v59 = vmax.f32 %v1484_v45, 0.0 }
 0x1bf   : > { %v1543_v47 = vsel %vm1541_vm0, %v1522_v59, 0.0 }
 0x1c0   : > { %v1560_v54 = vsel %vm1558_vm1, %v1543_v47, -inf }
 0x1c1   : > { %v1561_v42 = vmax.f32 %v1559_v62, %v1560_v54 }
 0x1c2   : > { %v1486_v61 = vpop.f32.mrf.mxu2 }
 0x1c3   : > { %v1487_v49 = vadd.f32 %v2735_v38, %v1486_v61  ;;  %v1562_v5 = vrot.slane %v1561_v42, 4 }
 0x1c5   : > { %v1523_v50 = vmax.f32 %v1487_v49, 0.0  ;;  %v1563_v53 = vmax.f32 %v1561_v42, %v1562_v5  ;;  %v1632_v49 = vld [vmem:[%s2838_s4 + $0x8] sm:$0xff]  ;;  %v1631_v5 = vld [vmem:[%s2838_s4] sm:$0xff] }
 0x1c6   : > { %1675 = vmatpush.msrb.mxu3 %v1632_v49 }
 0x1c7   : > { %v1568_v57 = vsel %vm1558_vm1, %v1523_v50, -inf  ;;  %v1564_v3 = vrot.slane %v1563_v53, 2 }
 0x1c8   : > { %1676 = vmatpush.msrb.mxu3 %v1631_v5 }
 0x1c9   : > { %v1565_v22 = vmax.f32 %v1563_v53, %v1564_v3 }
 0x1ca   : > { %v1488_v11 = vpop.f32.mrf.mxu2 }
 0x1cb   : > { %v1489_v51 = vadd.f32 %v2735_v38, %v1488_v11  ;;  %v1566_v8 = vrot.slane %v1565_v22, 1 }
 0x1cd   : > { %v1524_v55 = vmax.f32 %v1489_v51, 0.0  ;;  %v1567_v10 = vmax.f32 %v1565_v22, %v1566_v8 }
 0x1cf   : > { %v1545_v56 = vsel %vm1541_vm0, %v1524_v55, 0.0 }
 0x1d0   : > { %v1569_v63 = vsel %vm1558_vm1, %v1545_v56, -inf }
 0x1d1   : > { %v1570_v4 = vmax.f32 %v1568_v57, %v1569_v63 }
 0x1d3   : > { %v1571_v0 = vrot.slane %v1570_v4, 4 }
 0x1d5   : > { %v1572_v52 = vmax.f32 %v1570_v4, %v1571_v0 }
 0x1d6   : > { %v1491_v6 = vpop.f32.mrf.mxu2 }
 0x1d7   : > { %v1573_v7 = vrot.slane %v1572_v52, 2  ;;  %v1492_v9 = vadd.f32 %v2735_v38, %v1491_v6 }
 0x1d9   : > { %v1574_v35 = vmax.f32 %v1572_v52, %v1573_v7  ;;  %v1525_v17 = vmax.f32 %v1492_v9, 0.0 }
 0x1db   : > { %v1575_v58 = vrot.slane %v1574_v35, 1  ;;  %v1577_v20 = vsel %vm1558_vm1, %v1525_v17, -inf }
 0x1dd   : > { %v1576_v12 = vmax.f32 %v1574_v35, %v1575_v58 }
 0x1de   : > { %v1493_v14 = vpop.f32.mrf.mxu2 }
 0x1df   : > { %v1646_v15 = vsel %vm1645_vm2, %v1576_v12, %v1567_v10  ;;  %v1494_v30 = vadd.f32 %v2735_v38, %v1493_v14 }
 0x1e1   : > { %v1526_v18 = vmax.f32 %v1494_v30, 0.0 }
 0x1e3   : > { %v1547_v19 = vsel %vm1541_vm0, %v1526_v18, 0.0 }
 0x1e4   : > { %v1578_v37 = vsel %vm1558_vm1, %v1547_v19, -inf }
 0x1e5   : > { %v1579_v13 = vmax.f32 %v1577_v20, %v1578_v37 }
 0x1e7   : > { %v1580_v21 = vrot.slane %v1579_v13, 4 }
 0x1e9   : > { %v1581_v23 = vmax.f32 %v1579_v13, %v1580_v21 }
 0x1eb   : > { %v1582_v24 = vrot.slane %v1581_v23, 2  ;;  %v1496_v28 = vpop.f32.mrf.mxu2 }
 0x1ec   : > { %v1497_v29 = vadd.f32 %v2735_v38, %v1496_v28 }
 0x1ed   : > { %v1583_v25 = vmax.f32 %v1581_v23, %v1582_v24 }
 0x1ee   : > { %v1527_v46 = vmax.f32 %v1497_v29, 0.0 }
 0x1ef   : > { %v1584_v26 = vrot.slane %v1583_v25, 1 }
 0x1f0   : > { %v1586_v51 = vsel %vm1558_vm1, %v1527_v46, -inf }
 0x1f1   : > { %v1585_v1 = vmax.f32 %v1583_v25, %v1584_v26 }
 0x1f3   : > { %v2759_v27 = vsel %vm1647_vm3, %v1585_v1, %v1646_v15  ;;  %v1498_v31 = vpop.f32.mrf.mxu2 }
 0x1f4   : > { %v1499_v34 = vadd.f32 %v2735_v38, %v1498_v31 }
 0x1f6   : > { %v1528_v36 = vmax.f32 %v1499_v34, 0.0 }
 0x1f8   : > { %v1549_v44 = vsel %vm1541_vm0, %v1528_v36, 0.0 }
 0x1f9   : > { %v1587_v54 = vsel %vm1558_vm1, %v1549_v44, -inf }
 0x1fa   : > { %v1588_v53 = vmax.f32 %v1586_v51, %v1587_v54 }
 0x1fc   : > { %v1589_v0 = vrot.slane %v1588_v53, 4 }
 0x1fd   : > { %v1501_v16 = vpop.f32.mrf.mxu2 }
 0x1fe   : > { %v1502_v39 = vadd.f32 %v2735_v38, %v1501_v16  ;;  %v1590_v35 = vmax.f32 %v1588_v53, %v1589_v0 }
 0x200   : > { %v1529_v47 = vmax.f32 %v1502_v39, 0.0  ;;  %v1591_v19 = vrot.slane %v1590_v35, 2 }
 0x202   : > { %v1595_v55 = vsel %vm1558_vm1, %v1529_v47, -inf  ;;  %v1592_v26 = vmax.f32 %v1590_v35, %v1591_v19 }
 0x205   : > { %v1503_v32 = vpop.f32.mrf.mxu2 }
 0x206   : > { %v1504_v2 = vadd.f32 %v2735_v38, %v1503_v32 }
 0x208   : > { %v1530_v60 = vmax.f32 %v1504_v2, 0.0  ;;  %v1593_v2 = vrot.slane %v1592_v26, 1 }
 0x20a   : > { %v1551_v59 = vsel %vm1541_vm0, %v1530_v60, 0.0 }
 0x20b   : > { %v1596_v11 = vsel %vm1558_vm1, %v1551_v59, -inf }
 0x20c   : > { %v1597_v56 = vmax.f32 %v1595_v55, %v1596_v11 }
 0x20e   : > { %v1598_v22 = vrot.slane %v1597_v56, 4 }
 0x210   : > { %v1599_v10 = vmax.f32 %v1597_v56, %v1598_v22 }
 0x212   : > { %v1600_v13 = vrot.slane %v1599_v10, 2 }
 0x214   : > { %v1601_v16 = vmax.f32 %v1599_v10, %v1600_v13 }
 0x216   : > { %v1602_v36 = vrot.slane %v1601_v16, 1 }
 0x218   : > { %v1603_v43 = vmax.f32 %v1601_v16, %v1602_v36 }
 0x228   : > { %v1506_v33 = vpop.f32.mrf.mxu2 }
 0x229   : > { %v1507_v41 = vadd.f32 %v2735_v38, %v1506_v33 }
 0x22b   : > { %v1531_v42 = vmax.f32 %v1507_v41, 0.0 }
 0x22d   : > { %v1604_v57 = vsel %vm1558_vm1, %v1531_v42, -inf }
 0x230   : > { %v1508_v48 = vpop.f32.mrf.mxu2 }
 0x231   : > { %v1509_v40 = vadd.f32 %v2735_v38, %v1508_v48 }
 0x233   : > { %v1532_v45 = vmax.f32 %v1509_v40, 0.0  ;;  %v1594_v40 = vmax.f32 %v1592_v26, %v1593_v2 }
 0x235   : > { %v1553_v62 = vsel %vm1541_vm0, %v1532_v45, 0.0  ;;  %v1650_v59 = vsel %vm1649_vm4, %v1594_v40, %v2759_v27  ;;  %v2095_v27 = vld [vmem:[%s2839_s5] ss:$0 sm:$0xff] }
 0x236   : > { %v1516_v61 = vpop.f32.mrf.mxu3  ;;  %v1605_v50 = vsel %vm1558_vm1, %v1553_v62, -inf  ;;  %v1652_v62 = vsel %vm1651_vm5, %v1603_v43, %v1650_v59 }
 0x237   : > { %v1606_v63 = vmax.f32 %v1604_v57, %v1605_v50  ;;  %v1517_v4 = vadd.f32 %v2735_v38, %v1516_v61 }
 0x239   : > { %v1607_v6 = vrot.slane %v1606_v63, 4  ;;  %v1535_v8 = vmax.f32 %v1517_v4, 0.0 }
 0x23b   : > { %v1511_v3 = vpop.f32.mrf.mxu2  ;;  %v1608_v12 = vmax.f32 %v1606_v63, %v1607_v6  ;;  %v1622_v30 = vsel %vm1558_vm1, %v1535_v8, -inf }
 0x23c   : > { %v1512_v58 = vadd.f32 %v2735_v38, %v1511_v3 }
 0x23d   : > { %v1609_v23 = vrot.slane %v1608_v12, 2 }
 0x23e   : > { %v1518_v52 = vpop.f32.mrf.mxu3  ;;  %v1533_v20 = vmax.f32 %v1512_v58, 0.0 }
 0x23f   : > { %v1519_v7 = vadd.f32 %v2735_v38, %v1518_v52  ;;  %v1610_v33 = vmax.f32 %v1608_v12, %v1609_v23 }
 0x240   : > { %v1613_v1 = vsel %vm1558_vm1, %v1533_v20, -inf }
 0x241   : > { %v1536_v9 = vmax.f32 %v1519_v7, 0.0  ;;  %v1611_v60 = vrot.slane %v1610_v33, 1 }
 0x243   : > { %v1557_v14 = vsel %vm1541_vm0, %v1536_v9, 0.0  ;;  %v1513_v15 = vpop.f32.mrf.mxu2  ;;  %v1612_v44 = vmax.f32 %v1610_v33, %v1611_v60 }
 0x244   : > { %v1623_v17 = vsel %vm1558_vm1, %v1557_v14, -inf  ;;  %v1514_v18 = vadd.f32 %v2735_v38, %v1513_v15 }
 0x245   : > { %v1624_v37 = vmax.f32 %v1622_v30, %v1623_v17  ;;  %v1654_v42 = vsel %vm1653_vm6, %v1612_v44, %v1652_v62 }
 0x246   : > { %v1534_v21 = vmax.f32 %v1514_v18, 0.0 }
 0x247   : > { %v1625_v24 = vrot.slane %v1624_v37, 4 }
 0x248   : > { %v1555_v25 = vsel %vm1541_vm0, %v1534_v21, 0.0 }
 0x249   : > { %v1626_v28 = vmax.f32 %v1624_v37, %v1625_v24  ;;  %v1614_v31 = vsel %vm1558_vm1, %v1555_v25, -inf }
 0x24a   : > { %v1615_v32 = vmax.f32 %v1613_v1, %v1614_v31 }
 0x24b   : > { %v1627_v38 = vrot.slane %v1626_v28, 2 }
 0x24c   : > { %v1616_v34 = vrot.slane %v1615_v32, 4 }
 0x24d   : > { %v1628_v48 = vmax.f32 %v1626_v28, %v1627_v38 }
 0x24e   : > { %v1617_v29 = vmax.f32 %v1615_v32, %v1616_v34 }
 0x24f   : > { %v1629_v45 = vrot.slane %v1628_v48, 1 }
 0x250   : > { %v1618_v39 = vrot.slane %v1617_v29, 2 }
 0x251   : > { %v1630_v54 = vmax.f32 %v1628_v48, %v1629_v45 }
 0x252   : > { %v1619_v41 = vmax.f32 %v1617_v29, %v1618_v39 }
 0x254   : > { %v1620_v46 = vrot.slane %v1619_v41, 1 }
 0x256   : > { %v1621_v47 = vmax.f32 %v1619_v41, %v1620_v46 }
 0x258   : > { %v1656_v61 = vsel %vm1655_vm7, %v1621_v47, %v1654_v42 }
 0x259   : > { %v1658_v49 = vsel %vm1657_vm8, %v1630_v54, %v1656_v61 }
 0x25a   : > { %1957 = vmatmul.msk.f32.vlgmr.msrb.gmra.mxu3 %vm1558_vm1, %v1658_v49 }
 0x2dd   : > { %v1678_v5 = vpop.f32.mrf.mxu3 }
 0x2de   : > { %v1679_v11 = vadd.f32 %v2095_v27, %v1678_v5 }
 0x2e0   : > { %1681 = vst [vmem:[%s247_s18] sm:$0xff] %v1679_v11 }
 0x2e1   : > { %2123 = shalt.err (!%p2120_p3)
}
 0x2e2   : > { %2011 = dma.vmem_to_hbm [thread:$0]  (%p2234_p5), %s1696_s14, 128, %s1698_s19, %s1683_s20  }
 0x2e3 PF: > { %p2017_p4 = scmp.ge.s32.totalorder %s2158_s24, 2  ;;  %s1709_s10 = sand.u32 1, %s2146_s21  }
 0x2e4   : > { %s1710_s13 = scalar_lea.sflag [#allocation3], %s1709_s10 }
 0x2e5   : > { %p2014_p7 = pnand %p2017_p4, %p2238_p6 }
 0x2e7   : > { %p2015_p8 = pneg %p2014_p7 }
 0x2e9   : > { %2141 = dma.done.wait (%p2015_p8), %s1710_s13, 128  }
 0x2ea   : > { %2143 = vsyncadd (%p2015_p8), %s1710_s13, 4294967168  ;;  %p16_p9 = scmp.ge.s32.totalorder %s2222_s27, 4   ;;  %s2843_s21 = smov %s2150_s22 }
 0x2eb   : > { %s2844_s22 = smov %s2154_s23  ;;  %s2845_s23 = smov %s2232_s30 }
 0x2ec   : > { %s2846_s24 = smov %s2222_s27  ;;  %18 = sbr.rel (!%p16_p9) target bundleno = 3 (0x3), region = 79 }
 0x2f1   :  { %1716 = vsyncpa [#allocation3], 1 }
 0x2f2   :  { %1718 = vsyncpa [#allocation3 + $0x1], 1 }

</bundles_post_ra>
